<compile_context>
chip_gen: v7x
topology: tpu7x:2x2x1
jax: 0.10.0
libtpu: 0.0.40
codegen_flags: <defaults>
</compile_context>

<pallas_src>
import math
import functools

import jax
import jax.numpy as jnp
from jax.experimental import pallas as pl
from jax.experimental.pallas import tpu as pltpu

NEG_INF = -1e30  # additive key-padding bias (softmax weight underflows to 0)


# ----------------------------------------------------------------------------
# In-kernel math helpers (traced inside the Pallas kernel)
# ----------------------------------------------------------------------------
def _layer_norm(x, gamma, beta, eps=1e-5):
    # PyTorch nn.LayerNorm: biased variance, eps inside the sqrt.
    mean = jnp.mean(x, axis=-1, keepdims=True)
    var = jnp.mean((x - mean) ** 2, axis=-1, keepdims=True)
    return (x - mean) * jax.lax.rsqrt(var + eps) * gamma + beta


def _erf_f32(x):
    # Abramowitz & Stegun 7.1.26 rational approximation, |err| < 1.5e-7
    # (matches exact erf to float32 precision; avoids relying on an erf
    # primitive lowering inside Mosaic).
    a1, a2, a3, a4, a5 = 0.254829592, -0.284496736, 1.421413741, -1.453152027, 1.061405429
    pp = 0.3275911
    ax = jnp.abs(x)
    t = 1.0 / (1.0 + pp * ax)
    poly = ((((a5 * t + a4) * t + a3) * t + a2) * t + a1) * t
    y = 1.0 - poly * jnp.exp(-ax * ax)
    return jnp.where(x >= 0, y, -y)


def _gelu_exact(x):
    # torch.nn.functional.gelu (exact, erf-based) -- what activation='gelu' uses.
    return 0.5 * x * (1.0 + _erf_f32(x * (1.0 / math.sqrt(2.0))))


# ----------------------------------------------------------------------------
# Fused kernel: all encoder layers (grid axis = layer) + final LayerNorm
# ----------------------------------------------------------------------------
def encoder_stack_kernel(batch, seq, num_heads,
                         x_ref, mask_ref,
                         ln1g_ref, ln1b_ref, wqkv_ref, bqkv_ref, wo_ref, bo_ref,
                         ln2g_ref, ln2b_ref, w1_ref, b1_ref, w2_ref, b2_ref,
                         fng_ref, fnb_ref,
                         o_ref):
    d_model = x_ref.shape[-1]
    hd = d_model // num_heads
    scale = 1.0 / math.sqrt(hd)
    layer = pl.program_id(0)

    # The output block has a constant index_map, so it stays resident in VMEM
    # across the whole layer axis: use it as the residual-stream carry.
    @pl.when(layer == 0)
    def _():
        o_ref[...] = x_ref[...]

    x = o_ref[...]                                       # (B*T, D)

    # --- self-attention sub-block (norm_first) -------------------------------
    h = _layer_norm(x, ln1g_ref[0], ln1b_ref[0])
    qkv = jnp.dot(h, wqkv_ref[0], preferred_element_type=jnp.float32) + bqkv_ref[0]

    per_batch = []
    for b in range(batch):                               # tiny static batch loop
        rows = slice(b * seq, (b + 1) * seq)
        key_bias = mask_ref[b][None, :]                  # (1, T) additive key bias
        heads = []
        for hi in range(num_heads):
            q_h = qkv[rows, hi * hd:(hi + 1) * hd]                               # (T, hd)
            k_h = qkv[rows, d_model + hi * hd:d_model + (hi + 1) * hd]           # (T, hd)
            v_h = qkv[rows, 2 * d_model + hi * hd:2 * d_model + (hi + 1) * hd]   # (T, hd)
            s = jax.lax.dot_general(q_h, k_h, (((1,), (1,)), ((), ())),
                                    preferred_element_type=jnp.float32) * scale  # (T, T)
            s = s + key_bias                             # key padding mask
            s = s - jnp.max(s, axis=-1, keepdims=True)   # stable softmax
            p = jnp.exp(s)
            p = p * pl.reciprocal(jnp.sum(p, axis=-1, keepdims=True), approx=True)
            heads.append(jnp.dot(p, v_h, preferred_element_type=jnp.float32))    # (T, hd)
        per_batch.append(jnp.concatenate(heads, axis=-1))                        # (T, D)
    attn = jnp.concatenate(per_batch, axis=0)            # (B*T, D) concat(heads)
    attn = jnp.dot(attn, wo_ref[0], preferred_element_type=jnp.float32) + bo_ref[0]
    x = x + attn                                         # residual (dropout1 = id)

    # --- feed-forward sub-block (norm_first) ---------------------------------
    h2 = _layer_norm(x, ln2g_ref[0], ln2b_ref[0])
    ff = jnp.dot(h2, w1_ref[0], preferred_element_type=jnp.float32) + b1_ref[0]
    ff = _gelu_exact(ff)
    ff = jnp.dot(ff, w2_ref[0], preferred_element_type=jnp.float32) + b2_ref[0]
    x = x + ff                                           # residual (dropout2 = id)

    o_ref[...] = x                                       # carry for next layer

    # --- final encoder LayerNorm on the last layer ---------------------------
    @pl.when(layer == pl.num_programs(0) - 1)
    def _():
        o_ref[...] = _layer_norm(x, fng_ref[...], fnb_ref[...])


# ----------------------------------------------------------------------------
# Wrapper: pad seq to a sublane multiple, build mask bias, one pallas_call
# ----------------------------------------------------------------------------
def my_transformer_encoder(params, x, padding_mask, *, num_heads):
    B, S, D = x.shape
    L, _, d_hidden = params['w1'].shape
    Tp = ((S + 7) // 8) * 8                              # pad seq to 8-sublane multiple
    pad = Tp - S

    xp = jnp.pad(x.astype(jnp.float32), ((0, 0), (0, pad), (0, 0)))
    maskp = jnp.pad(padding_mask.astype(bool), ((0, 0), (0, pad)), constant_values=True)
    mask_bias = jnp.where(maskp, NEG_INF, 0.0).astype(jnp.float32)   # (B, Tp)
    x2d = xp.reshape(B * Tp, D)

    def stacked_spec(trailing):
        # per-layer weight block streamed along the layer grid axis
        return pl.BlockSpec((1,) + trailing, lambda l: (l,) + (0,) * len(trailing))

    in_specs = [
        pl.BlockSpec((B * Tp, D), lambda l: (0, 0)),     # x (loaded once)
        pl.BlockSpec((B, Tp), lambda l: (0, 0)),         # additive key-padding bias
        stacked_spec((1, D)),                            # ln1_g
        stacked_spec((1, D)),                            # ln1_b
        stacked_spec((D, 3 * D)),                        # wqkv (fused q|k|v)
        stacked_spec((1, 3 * D)),                        # bqkv
        stacked_spec((D, D)),                            # wo
        stacked_spec((1, D)),                            # bo
        stacked_spec((1, D)),                            # ln2_g
        stacked_spec((1, D)),                            # ln2_b
        stacked_spec((D, d_hidden)),                     # w1
        stacked_spec((1, d_hidden)),                     # b1
        stacked_spec((d_hidden, D)),                     # w2
        stacked_spec((1, D)),                            # b2
        pl.BlockSpec((1, D), lambda l: (0, 0)),          # final LN gamma
        pl.BlockSpec((1, D), lambda l: (0, 0)),          # final LN beta
    ]
    out_spec = pl.BlockSpec((B * Tp, D), lambda l: (0, 0))   # resident accumulator

    kernel = functools.partial(encoder_stack_kernel, B, Tp, num_heads)
    out2d = pl.pallas_call(
        kernel,
        out_shape=jax.ShapeDtypeStruct((B * Tp, D), jnp.float32),
        grid_spec=pltpu.PrefetchScalarGridSpec(
            num_scalar_prefetch=0,
            grid=(L,),
            in_specs=in_specs,
            out_specs=out_spec),
        compiler_params=pltpu.CompilerParams(
            dimension_semantics=("arbitrary",)),         # sequential layer carry
    )(x2d, mask_bias,
      params['ln1_g'], params['ln1_b'], params['wqkv'], params['bqkv'],
      params['wo'], params['bo'], params['ln2_g'], params['ln2_b'],
      params['w1'], params['b1'], params['w2'], params['b2'],
      params['final_ln_g'], params['final_ln_b'])

    return out2d.reshape(B, Tp, D)[:, :S, :]


# ----------------------------------------------------------------------------
# Parameters (deterministic, synthetic — mirrors the PyTorch module's shapes;
# linear weights stored as (in, out) so y = x @ W + b)
# ----------------------------------------------------------------------------
def _linear_init(key, n_in, n_out):
    kw, kb = jax.random.split(key)
    lim = 1.0 / math.sqrt(n_in)
    w = jax.random.uniform(kw, (n_in, n_out), jnp.float32, -lim, lim)
    b = jax.random.uniform(kb, (1, n_out), jnp.float32, -lim, lim)
    return w, b


def init_params(key, *, d_model, d_hidden, num_layers):
    keys = jax.random.split(key, num_layers)
    per_layer = []
    for li in range(num_layers):
        lk = jax.random.split(keys[li], 4)
        wqkv, bqkv = _linear_init(lk[0], d_model, 3 * d_model)   # in_proj (fused q|k|v)
        wo, bo = _linear_init(lk[1], d_model, d_model)           # out_proj
        w1, b1 = _linear_init(lk[2], d_model, d_hidden)          # linear1
        w2, b2 = _linear_init(lk[3], d_hidden, d_model)          # linear2
        per_layer.append(dict(
            ln1_g=jnp.ones((1, d_model), jnp.float32),
            ln1_b=jnp.zeros((1, d_model), jnp.float32),
            wqkv=wqkv, bqkv=bqkv, wo=wo, bo=bo,
            ln2_g=jnp.ones((1, d_model), jnp.float32),
            ln2_b=jnp.zeros((1, d_model), jnp.float32),
            w1=w1, b1=b1, w2=w2, b2=b2))
    params = {name: jnp.stack([ly[name] for ly in per_layer], axis=0)
              for name in per_layer[0]}
    params['final_ln_g'] = jnp.ones((1, d_model), jnp.float32)   # encoder_norm
    params['final_ln_b'] = jnp.zeros((1, d_model), jnp.float32)
    return params


# ----------------------------------------------------------------------------
if __name__ == "__main__":
    B, S = 2, 12                     # batch, sequence length
    D_MODEL, D_HIDDEN = 32, 64       # d_model, dim_feedforward (small test sizes)
    N_HEAD, N_LAYERS = 4, 10         # num_head, NumLayers (10, as in the module)

    key = jax.random.PRNGKey(0)
    kx, kp = jax.random.split(key)
    x = jax.random.normal(kx, (B, S, D_MODEL), jnp.float32)
    # boolean key-padding mask (True = padded), as fed to src_key_padding_mask
    padding_mask = jnp.zeros((B, S), dtype=bool)
    padding_mask = padding_mask.at[0, -2:].set(True)
    padding_mask = padding_mask.at[1, -3:].set(True)

    params = init_params(kp, d_model=D_MODEL, d_hidden=D_HIDDEN, num_layers=N_LAYERS)

    out = my_transformer_encoder(params, x, padding_mask, num_heads=N_HEAD)
    jax.block_until_ready(out)

    assert out.shape == (B, S, D_MODEL)
    assert bool(jnp.all(jnp.isfinite(out)))
    print("KERNEL_OK")
</pallas_src>

<mosaic_0001>
module attributes {stable_mosaic.version = 11 : i64} {
  func.func @encoder_stack_kernel(%arg0: i32, %arg1: memref<32x32xf32, #tpu.memory_space<vmem>>, %arg2: memref<2x16xf32, #tpu.memory_space<vmem>>, %arg3: memref<1x1x32xf32, #tpu.memory_space<vmem>>, %arg4: memref<1x1x32xf32, #tpu.memory_space<vmem>>, %arg5: memref<1x32x96xf32, #tpu.memory_space<vmem>>, %arg6: memref<1x1x96xf32, #tpu.memory_space<vmem>>, %arg7: memref<1x32x32xf32, #tpu.memory_space<vmem>>, %arg8: memref<1x1x32xf32, #tpu.memory_space<vmem>>, %arg9: memref<1x1x32xf32, #tpu.memory_space<vmem>>, %arg10: memref<1x1x32xf32, #tpu.memory_space<vmem>>, %arg11: memref<1x32x64xf32, #tpu.memory_space<vmem>>, %arg12: memref<1x1x64xf32, #tpu.memory_space<vmem>>, %arg13: memref<1x64x32xf32, #tpu.memory_space<vmem>>, %arg14: memref<1x1x32xf32, #tpu.memory_space<vmem>>, %arg15: memref<1x32xf32, #tpu.memory_space<vmem>>, %arg16: memref<1x32xf32, #tpu.memory_space<vmem>>, %arg17: memref<32x32xf32, #tpu.memory_space<vmem>>) attributes {dimension_semantics = [#tpu.dimension_semantics<arbitrary>], iteration_bounds = array<i64: 10>, scalar_prefetch = 0 : i64, scratch_operands = 0 : i64, tpu.core_type = #tpu.core_type<tc>, window_params = [{pipeline_mode = #tpu.pipeline_mode<synchronous>, transform_indices = @transform_0, window_bounds = array<i64: 32, 32>}, {pipeline_mode = #tpu.pipeline_mode<synchronous>, transform_indices = @transform_1, window_bounds = array<i64: 2, 16>}, {transform_indices = @transform_2, window_bounds = array<i64: 1, 1, 32>}, {transform_indices = @transform_3, window_bounds = array<i64: 1, 1, 32>}, {transform_indices = @transform_4, window_bounds = array<i64: 1, 32, 96>}, {transform_indices = @transform_5, window_bounds = array<i64: 1, 1, 96>}, {transform_indices = @transform_6, window_bounds = array<i64: 1, 32, 32>}, {transform_indices = @transform_7, window_bounds = array<i64: 1, 1, 32>}, {transform_indices = @transform_8, window_bounds = array<i64: 1, 1, 32>}, {transform_indices = @transform_9, window_bounds = array<i64: 1, 1, 32>}, {transform_indices = @transform_10, window_bounds = array<i64: 1, 32, 64>}, {transform_indices = @transform_11, window_bounds = array<i64: 1, 1, 64>}, {transform_indices = @transform_12, window_bounds = array<i64: 1, 64, 32>}, {transform_indices = @transform_13, window_bounds = array<i64: 1, 1, 32>}, {pipeline_mode = #tpu.pipeline_mode<synchronous>, transform_indices = @transform_14, window_bounds = array<i64: 1, 32>}, {pipeline_mode = #tpu.pipeline_mode<synchronous>, transform_indices = @transform_15, window_bounds = array<i64: 1, 32>}, {pipeline_mode = #tpu.pipeline_mode<synchronous>, transform_indices = @transform_16, window_bounds = array<i64: 32, 32>}]} {
    %c0_i32 = arith.constant 0 : i32
    %0 = arith.cmpi eq, %arg0, %c0_i32 : i32
    %1 = arith.extui %0 : i1 to i32
    %c0_i32_0 = arith.constant 0 : i32
    %2 = arith.cmpi ne, %1, %c0_i32_0 : i32
    scf.if %2 {
      %c0_112 = arith.constant 0 : index
      %c0_113 = arith.constant 0 : index
      %291 = vector.load %arg1[%c0_112, %c0_113] : memref<32x32xf32, #tpu.memory_space<vmem>>, vector<32x32xf32>
      %c0_114 = arith.constant 0 : index
      %c0_115 = arith.constant 0 : index
      %292 = vector.load %arg17[%c0_114, %c0_115] : memref<32x32xf32, #tpu.memory_space<vmem>>, vector<32x32xf32>
      tpu.vector_store %arg17[%c0_114, %c0_115], %291 {strides = array<i32>} : memref<32x32xf32, #tpu.memory_space<vmem>>, vector<32x32xf32>,
    } else {
    }
    %c0 = arith.constant 0 : index
    %c0_1 = arith.constant 0 : index
    %3 = vector.load %arg17[%c0, %c0_1] : memref<32x32xf32, #tpu.memory_space<vmem>>, vector<32x32xf32>
    %c0_2 = arith.constant 0 : index
    %c0_3 = arith.constant 0 : index
    %c0_4 = arith.constant 0 : index
    %4 = vector.load %arg3[%c0_2, %c0_3, %c0_4] : memref<1x1x32xf32, #tpu.memory_space<vmem>>, vector<1x1x32xf32>
    %5 = vector.shape_cast %4 : vector<1x1x32xf32> to vector<1x32xf32>
    %c0_5 = arith.constant 0 : index
    %c0_6 = arith.constant 0 : index
    %c0_7 = arith.constant 0 : index
    %6 = vector.load %arg4[%c0_5, %c0_6, %c0_7] : memref<1x1x32xf32, #tpu.memory_space<vmem>>, vector<1x1x32xf32>
    %7 = vector.shape_cast %6 : vector<1x1x32xf32> to vector<1x32xf32>
    %cst = arith.constant dense<0.000000e+00> : vector<32xf32>
    %8 = vector.multi_reduction <add>, %3, %cst [1] : vector<32x32xf32> to vector<32xf32>
    %9 = vector.shape_cast %8 : vector<32xf32> to vector<32x1xf32>
    %cst_8 = arith.constant 3.200000e+01 : f32
    %10 = vector.broadcast %cst_8 : f32 to vector<32x1xf32>
    %11 = arith.divf %9, %10 : vector<32x1xf32>
    %12 = vector.broadcast %11 : vector<32x1xf32> to vector<32x32xf32>
    %13 = arith.subf %3, %12 : vector<32x32xf32>
    %14 = arith.mulf %13, %13 : vector<32x32xf32>
    %cst_9 = arith.constant dense<0.000000e+00> : vector<32xf32>
    %15 = vector.multi_reduction <add>, %14, %cst_9 [1] : vector<32x32xf32> to vector<32xf32>
    %16 = vector.shape_cast %15 : vector<32xf32> to vector<32x1xf32>
    %cst_10 = arith.constant 3.200000e+01 : f32
    %17 = vector.broadcast %cst_10 : f32 to vector<32x1xf32>
    %18 = arith.divf %16, %17 : vector<32x1xf32>
    %19 = vector.broadcast %11 : vector<32x1xf32> to vector<32x32xf32>
    %20 = arith.subf %3, %19 : vector<32x32xf32>
    %cst_11 = arith.constant 9.99999974E-6 : f32
    %21 = vector.broadcast %cst_11 : f32 to vector<32x1xf32>
    %22 = arith.addf %18, %21 : vector<32x1xf32>
    %23 = math.rsqrt %22 : vector<32x1xf32>
    %24 = vector.broadcast %23 : vector<32x1xf32> to vector<32x32xf32>
    %25 = arith.mulf %20, %24 : vector<32x32xf32>
    %26 = vector.broadcast %5 : vector<1x32xf32> to vector<32x32xf32>
    %27 = arith.mulf %25, %26 : vector<32x32xf32>
    %28 = vector.broadcast %7 : vector<1x32xf32> to vector<32x32xf32>
    %29 = arith.addf %27, %28 : vector<32x32xf32>
    %c0_12 = arith.constant 0 : index
    %c0_13 = arith.constant 0 : index
    %c0_14 = arith.constant 0 : index
    %30 = vector.load %arg5[%c0_12, %c0_13, %c0_14] : memref<1x32x96xf32, #tpu.memory_space<vmem>>, vector<1x32x96xf32>
    %31 = vector.shape_cast %30 : vector<1x32x96xf32> to vector<32x96xf32>
    %cst_15 = arith.constant dense<0.000000e+00> : vector<32x96xf32>
    %32 = tpu.matmul %29, %31, %cst_15 {dimension_numbers = #tpu.dot_dimension_numbers<[1], [0], [0], [1], [0, 0, 1, 1], [], []>} : vector<32x32xf32>, vector<32x96xf32>, vector<32x96xf32> -> vector<32x96xf32>
    %c0_16 = arith.constant 0 : index
    %c0_17 = arith.constant 0 : index
    %c0_18 = arith.constant 0 : index
    %33 = vector.load %arg6[%c0_16, %c0_17, %c0_18] : memref<1x1x96xf32, #tpu.memory_space<vmem>>, vector<1x1x96xf32>
    %34 = vector.shape_cast %33 : vector<1x1x96xf32> to vector<1x96xf32>
    %35 = vector.broadcast %34 : vector<1x96xf32> to vector<32x96xf32>
    %36 = arith.addf %32, %35 : vector<32x96xf32>
    %c0_19 = arith.constant 0 : index
    %c0_20 = arith.constant 0 : index
    %37 = vector.load %arg2[%c0_19, %c0_20] : memref<2x16xf32, #tpu.memory_space<vmem>>, vector<1x16xf32>
    %38 = vector.shape_cast %37 : vector<1x16xf32> to vector<16xf32>
    %39 = vector.shape_cast %38 : vector<16xf32> to vector<1x16xf32>
    %40 = vector.extract_strided_slice %36 {offsets = [0, 0], sizes = [16, 8], strides = [1, 1]} : vector<32x96xf32> to vector<16x8xf32>
    %41 = vector.extract_strided_slice %36 {offsets = [0, 32], sizes = [16, 8], strides = [1, 1]} : vector<32x96xf32> to vector<16x8xf32>
    %42 = vector.extract_strided_slice %36 {offsets = [0, 64], sizes = [16, 8], strides = [1, 1]} : vector<32x96xf32> to vector<16x8xf32>
    %cst_21 = arith.constant dense<0.000000e+00> : vector<16x16xf32>
    %43 = tpu.matmul %40, %41, %cst_21 {dimension_numbers = #tpu.dot_dimension_numbers<[1], [1], [0], [0], [0, 0, 1, 0], [], []>} : vector<16x8xf32>, vector<16x8xf32>, vector<16x16xf32> -> vector<16x16xf32>
    %cst_22 = arith.constant 0.353553385 : f32
    %44 = vector.broadcast %cst_22 : f32 to vector<16x16xf32>
    %45 = arith.mulf %43, %44 : vector<16x16xf32>
    %46 = vector.broadcast %39 : vector<1x16xf32> to vector<16x16xf32>
    %47 = arith.addf %45, %46 : vector<16x16xf32>
    %cst_23 = arith.constant dense<0xFF800000> : vector<16xf32>
    %48 = vector.multi_reduction <maximumf>, %47, %cst_23 [1] : vector<16x16xf32> to vector<16xf32>
    %49 = vector.shape_cast %48 : vector<16xf32> to vector<16x1xf32>
    %50 = vector.broadcast %49 : vector<16x1xf32> to vector<16x16xf32>
    %51 = arith.subf %47, %50 : vector<16x16xf32>
    %52 = math.exp %51 : vector<16x16xf32>
    %cst_24 = arith.constant dense<0.000000e+00> : vector<16xf32>
    %53 = vector.multi_reduction <add>, %52, %cst_24 [1] : vector<16x16xf32> to vector<16xf32>
    %54 = vector.shape_cast %53 : vector<16xf32> to vector<16x1xf32>
    %55 = tpu.reciprocal %54 {approx = true} : vector<16x1xf32> -> vector<16x1xf32>
    %56 = vector.broadcast %55 : vector<16x1xf32> to vector<16x16xf32>
    %57 = arith.mulf %52, %56 : vector<16x16xf32>
    %cst_25 = arith.constant dense<0.000000e+00> : vector<16x8xf32>
    %58 = tpu.matmul %57, %42, %cst_25 {dimension_numbers = #tpu.dot_dimension_numbers<[1], [0], [0], [1], [0, 0, 1, 1], [], []>} : vector<16x16xf32>, vector<16x8xf32>, vector<16x8xf32> -> vector<16x8xf32>
    %59 = vector.extract_strided_slice %36 {offsets = [0, 8], sizes = [16, 8], strides = [1, 1]} : vector<32x96xf32> to vector<16x8xf32>
    %60 = vector.extract_strided_slice %36 {offsets = [0, 40], sizes = [16, 8], strides = [1, 1]} : vector<32x96xf32> to vector<16x8xf32>
    %61 = vector.extract_strided_slice %36 {offsets = [0, 72], sizes = [16, 8], strides = [1, 1]} : vector<32x96xf32> to vector<16x8xf32>
    %cst_26 = arith.constant dense<0.000000e+00> : vector<16x16xf32>
    %62 = tpu.matmul %59, %60, %cst_26 {dimension_numbers = #tpu.dot_dimension_numbers<[1], [1], [0], [0], [0, 0, 1, 0], [], []>} : vector<16x8xf32>, vector<16x8xf32>, vector<16x16xf32> -> vector<16x16xf32>
    %cst_27 = arith.constant 0.353553385 : f32
    %63 = vector.broadcast %cst_27 : f32 to vector<16x16xf32>
    %64 = arith.mulf %62, %63 : vector<16x16xf32>
    %65 = vector.broadcast %39 : vector<1x16xf32> to vector<16x16xf32>
    %66 = arith.addf %64, %65 : vector<16x16xf32>
    %cst_28 = arith.constant dense<0xFF800000> : vector<16xf32>
    %67 = vector.multi_reduction <maximumf>, %66, %cst_28 [1] : vector<16x16xf32> to vector<16xf32>
    %68 = vector.shape_cast %67 : vector<16xf32> to vector<16x1xf32>
    %69 = vector.broadcast %68 : vector<16x1xf32> to vector<16x16xf32>
    %70 = arith.subf %66, %69 : vector<16x16xf32>
    %71 = math.exp %70 : vector<16x16xf32>
    %cst_29 = arith.constant dense<0.000000e+00> : vector<16xf32>
    %72 = vector.multi_reduction <add>, %71, %cst_29 [1] : vector<16x16xf32> to vector<16xf32>
    %73 = vector.shape_cast %72 : vector<16xf32> to vector<16x1xf32>
    %74 = tpu.reciprocal %73 {approx = true} : vector<16x1xf32> -> vector<16x1xf32>
    %75 = vector.broadcast %74 : vector<16x1xf32> to vector<16x16xf32>
    %76 = arith.mulf %71, %75 : vector<16x16xf32>
    %cst_30 = arith.constant dense<0.000000e+00> : vector<16x8xf32>
    %77 = tpu.matmul %76, %61, %cst_30 {dimension_numbers = #tpu.dot_dimension_numbers<[1], [0], [0], [1], [0, 0, 1, 1], [], []>} : vector<16x16xf32>, vector<16x8xf32>, vector<16x8xf32> -> vector<16x8xf32>
    %78 = vector.extract_strided_slice %36 {offsets = [0, 16], sizes = [16, 8], strides = [1, 1]} : vector<32x96xf32> to vector<16x8xf32>
    %79 = vector.extract_strided_slice %36 {offsets = [0, 48], sizes = [16, 8], strides = [1, 1]} : vector<32x96xf32> to vector<16x8xf32>
    %80 = vector.extract_strided_slice %36 {offsets = [0, 80], sizes = [16, 8], strides = [1, 1]} : vector<32x96xf32> to vector<16x8xf32>
    %cst_31 = arith.constant dense<0.000000e+00> : vector<16x16xf32>
    %81 = tpu.matmul %78, %79, %cst_31 {dimension_numbers = #tpu.dot_dimension_numbers<[1], [1], [0], [0], [0, 0, 1, 0], [], []>} : vector<16x8xf32>, vector<16x8xf32>, vector<16x16xf32> -> vector<16x16xf32>
    %cst_32 = arith.constant 0.353553385 : f32
    %82 = vector.broadcast %cst_32 : f32 to vector<16x16xf32>
    %83 = arith.mulf %81, %82 : vector<16x16xf32>
    %84 = vector.broadcast %39 : vector<1x16xf32> to vector<16x16xf32>
    %85 = arith.addf %83, %84 : vector<16x16xf32>
    %cst_33 = arith.constant dense<0xFF800000> : vector<16xf32>
    %86 = vector.multi_reduction <maximumf>, %85, %cst_33 [1] : vector<16x16xf32> to vector<16xf32>
    %87 = vector.shape_cast %86 : vector<16xf32> to vector<16x1xf32>
    %88 = vector.broadcast %87 : vector<16x1xf32> to vector<16x16xf32>
    %89 = arith.subf %85, %88 : vector<16x16xf32>
    %90 = math.exp %89 : vector<16x16xf32>
    %cst_34 = arith.constant dense<0.000000e+00> : vector<16xf32>
    %91 = vector.multi_reduction <add>, %90, %cst_34 [1] : vector<16x16xf32> to vector<16xf32>
    %92 = vector.shape_cast %91 : vector<16xf32> to vector<16x1xf32>
    %93 = tpu.reciprocal %92 {approx = true} : vector<16x1xf32> -> vector<16x1xf32>
    %94 = vector.broadcast %93 : vector<16x1xf32> to vector<16x16xf32>
    %95 = arith.mulf %90, %94 : vector<16x16xf32>
    %cst_35 = arith.constant dense<0.000000e+00> : vector<16x8xf32>
    %96 = tpu.matmul %95, %80, %cst_35 {dimension_numbers = #tpu.dot_dimension_numbers<[1], [0], [0], [1], [0, 0, 1, 1], [], []>} : vector<16x16xf32>, vector<16x8xf32>, vector<16x8xf32> -> vector<16x8xf32>
    %97 = vector.extract_strided_slice %36 {offsets = [0, 24], sizes = [16, 8], strides = [1, 1]} : vector<32x96xf32> to vector<16x8xf32>
    %98 = vector.extract_strided_slice %36 {offsets = [0, 56], sizes = [16, 8], strides = [1, 1]} : vector<32x96xf32> to vector<16x8xf32>
    %99 = vector.extract_strided_slice %36 {offsets = [0, 88], sizes = [16, 8], strides = [1, 1]} : vector<32x96xf32> to vector<16x8xf32>
    %cst_36 = arith.constant dense<0.000000e+00> : vector<16x16xf32>
    %100 = tpu.matmul %97, %98, %cst_36 {dimension_numbers = #tpu.dot_dimension_numbers<[1], [1], [0], [0], [0, 0, 1, 0], [], []>} : vector<16x8xf32>, vector<16x8xf32>, vector<16x16xf32> -> vector<16x16xf32>
    %cst_37 = arith.constant 0.353553385 : f32
    %101 = vector.broadcast %cst_37 : f32 to vector<16x16xf32>
    %102 = arith.mulf %100, %101 : vector<16x16xf32>
    %103 = vector.broadcast %39 : vector<1x16xf32> to vector<16x16xf32>
    %104 = arith.addf %102, %103 : vector<16x16xf32>
    %cst_38 = arith.constant dense<0xFF800000> : vector<16xf32>
    %105 = vector.multi_reduction <maximumf>, %104, %cst_38 [1] : vector<16x16xf32> to vector<16xf32>
    %106 = vector.shape_cast %105 : vector<16xf32> to vector<16x1xf32>
    %107 = vector.broadcast %106 : vector<16x1xf32> to vector<16x16xf32>
    %108 = arith.subf %104, %107 : vector<16x16xf32>
    %109 = math.exp %108 : vector<16x16xf32>
    %cst_39 = arith.constant dense<0.000000e+00> : vector<16xf32>
    %110 = vector.multi_reduction <add>, %109, %cst_39 [1] : vector<16x16xf32> to vector<16xf32>
    %111 = vector.shape_cast %110 : vector<16xf32> to vector<16x1xf32>
    %112 = tpu.reciprocal %111 {approx = true} : vector<16x1xf32> -> vector<16x1xf32>
    %113 = vector.broadcast %112 : vector<16x1xf32> to vector<16x16xf32>
    %114 = arith.mulf %109, %113 : vector<16x16xf32>
    %cst_40 = arith.constant dense<0.000000e+00> : vector<16x8xf32>
    %115 = tpu.matmul %114, %99, %cst_40 {dimension_numbers = #tpu.dot_dimension_numbers<[1], [0], [0], [1], [0, 0, 1, 1], [], []>} : vector<16x16xf32>, vector<16x8xf32>, vector<16x8xf32> -> vector<16x8xf32>
    %116 = tpu.concatenate %58, %77, %96, %115 in 1 : vector<16x8xf32>, vector<16x8xf32>, vector<16x8xf32>, vector<16x8xf32> -> vector<16x32xf32>
    %c1 = arith.constant 1 : index
    %c0_41 = arith.constant 0 : index
    %117 = vector.load %arg2[%c1, %c0_41] : memref<2x16xf32, #tpu.memory_space<vmem>>, vector<1x16xf32>
    %118 = vector.shape_cast %117 : vector<1x16xf32> to vector<16xf32>
    %119 = vector.shape_cast %118 : vector<16xf32> to vector<1x16xf32>
    %120 = vector.extract_strided_slice %36 {offsets = [16, 0], sizes = [16, 8], strides = [1, 1]} : vector<32x96xf32> to vector<16x8xf32>
    %121 = vector.extract_strided_slice %36 {offsets = [16, 32], sizes = [16, 8], strides = [1, 1]} : vector<32x96xf32> to vector<16x8xf32>
    %122 = vector.extract_strided_slice %36 {offsets = [16, 64], sizes = [16, 8], strides = [1, 1]} : vector<32x96xf32> to vector<16x8xf32>
    %cst_42 = arith.constant dense<0.000000e+00> : vector<16x16xf32>
    %123 = tpu.matmul %120, %121, %cst_42 {dimension_numbers = #tpu.dot_dimension_numbers<[1], [1], [0], [0], [0, 0, 1, 0], [], []>} : vector<16x8xf32>, vector<16x8xf32>, vector<16x16xf32> -> vector<16x16xf32>
    %cst_43 = arith.constant 0.353553385 : f32
    %124 = vector.broadcast %cst_43 : f32 to vector<16x16xf32>
    %125 = arith.mulf %123, %124 : vector<16x16xf32>
    %126 = vector.broadcast %119 : vector<1x16xf32> to vector<16x16xf32>
    %127 = arith.addf %125, %126 : vector<16x16xf32>
    %cst_44 = arith.constant dense<0xFF800000> : vector<16xf32>
    %128 = vector.multi_reduction <maximumf>, %127, %cst_44 [1] : vector<16x16xf32> to vector<16xf32>
    %129 = vector.shape_cast %128 : vector<16xf32> to vector<16x1xf32>
    %130 = vector.broadcast %129 : vector<16x1xf32> to vector<16x16xf32>
    %131 = arith.subf %127, %130 : vector<16x16xf32>
    %132 = math.exp %131 : vector<16x16xf32>
    %cst_45 = arith.constant dense<0.000000e+00> : vector<16xf32>
    %133 = vector.multi_reduction <add>, %132, %cst_45 [1] : vector<16x16xf32> to vector<16xf32>
    %134 = vector.shape_cast %133 : vector<16xf32> to vector<16x1xf32>
    %135 = tpu.reciprocal %134 {approx = true} : vector<16x1xf32> -> vector<16x1xf32>
    %136 = vector.broadcast %135 : vector<16x1xf32> to vector<16x16xf32>
    %137 = arith.mulf %132, %136 : vector<16x16xf32>
    %cst_46 = arith.constant dense<0.000000e+00> : vector<16x8xf32>
    %138 = tpu.matmul %137, %122, %cst_46 {dimension_numbers = #tpu.dot_dimension_numbers<[1], [0], [0], [1], [0, 0, 1, 1], [], []>} : vector<16x16xf32>, vector<16x8xf32>, vector<16x8xf32> -> vector<16x8xf32>
    %139 = vector.extract_strided_slice %36 {offsets = [16, 8], sizes = [16, 8], strides = [1, 1]} : vector<32x96xf32> to vector<16x8xf32>
    %140 = vector.extract_strided_slice %36 {offsets = [16, 40], sizes = [16, 8], strides = [1, 1]} : vector<32x96xf32> to vector<16x8xf32>
    %141 = vector.extract_strided_slice %36 {offsets = [16, 72], sizes = [16, 8], strides = [1, 1]} : vector<32x96xf32> to vector<16x8xf32>
    %cst_47 = arith.constant dense<0.000000e+00> : vector<16x16xf32>
    %142 = tpu.matmul %139, %140, %cst_47 {dimension_numbers = #tpu.dot_dimension_numbers<[1], [1], [0], [0], [0, 0, 1, 0], [], []>} : vector<16x8xf32>, vector<16x8xf32>, vector<16x16xf32> -> vector<16x16xf32>
    %cst_48 = arith.constant 0.353553385 : f32
    %143 = vector.broadcast %cst_48 : f32 to vector<16x16xf32>
    %144 = arith.mulf %142, %143 : vector<16x16xf32>
    %145 = vector.broadcast %119 : vector<1x16xf32> to vector<16x16xf32>
    %146 = arith.addf %144, %145 : vector<16x16xf32>
    %cst_49 = arith.constant dense<0xFF800000> : vector<16xf32>
    %147 = vector.multi_reduction <maximumf>, %146, %cst_49 [1] : vector<16x16xf32> to vector<16xf32>
    %148 = vector.shape_cast %147 : vector<16xf32> to vector<16x1xf32>
    %149 = vector.broadcast %148 : vector<16x1xf32> to vector<16x16xf32>
    %150 = arith.subf %146, %149 : vector<16x16xf32>
    %151 = math.exp %150 : vector<16x16xf32>
    %cst_50 = arith.constant dense<0.000000e+00> : vector<16xf32>
    %152 = vector.multi_reduction <add>, %151, %cst_50 [1] : vector<16x16xf32> to vector<16xf32>
    %153 = vector.shape_cast %152 : vector<16xf32> to vector<16x1xf32>
    %154 = tpu.reciprocal %153 {approx = true} : vector<16x1xf32> -> vector<16x1xf32>
    %155 = vector.broadcast %154 : vector<16x1xf32> to vector<16x16xf32>
    %156 = arith.mulf %151, %155 : vector<16x16xf32>
    %cst_51 = arith.constant dense<0.000000e+00> : vector<16x8xf32>
    %157 = tpu.matmul %156, %141, %cst_51 {dimension_numbers = #tpu.dot_dimension_numbers<[1], [0], [0], [1], [0, 0, 1, 1], [], []>} : vector<16x16xf32>, vector<16x8xf32>, vector<16x8xf32> -> vector<16x8xf32>
    %158 = vector.extract_strided_slice %36 {offsets = [16, 16], sizes = [16, 8], strides = [1, 1]} : vector<32x96xf32> to vector<16x8xf32>
    %159 = vector.extract_strided_slice %36 {offsets = [16, 48], sizes = [16, 8], strides = [1, 1]} : vector<32x96xf32> to vector<16x8xf32>
    %160 = vector.extract_strided_slice %36 {offsets = [16, 80], sizes = [16, 8], strides = [1, 1]} : vector<32x96xf32> to vector<16x8xf32>
    %cst_52 = arith.constant dense<0.000000e+00> : vector<16x16xf32>
    %161 = tpu.matmul %158, %159, %cst_52 {dimension_numbers = #tpu.dot_dimension_numbers<[1], [1], [0], [0], [0, 0, 1, 0], [], []>} : vector<16x8xf32>, vector<16x8xf32>, vector<16x16xf32> -> vector<16x16xf32>
    %cst_53 = arith.constant 0.353553385 : f32
    %162 = vector.broadcast %cst_53 : f32 to vector<16x16xf32>
    %163 = arith.mulf %161, %162 : vector<16x16xf32>
    %164 = vector.broadcast %119 : vector<1x16xf32> to vector<16x16xf32>
    %165 = arith.addf %163, %164 : vector<16x16xf32>
    %cst_54 = arith.constant dense<0xFF800000> : vector<16xf32>
    %166 = vector.multi_reduction <maximumf>, %165, %cst_54 [1] : vector<16x16xf32> to vector<16xf32>
    %167 = vector.shape_cast %166 : vector<16xf32> to vector<16x1xf32>
    %168 = vector.broadcast %167 : vector<16x1xf32> to vector<16x16xf32>
    %169 = arith.subf %165, %168 : vector<16x16xf32>
    %170 = math.exp %169 : vector<16x16xf32>
    %cst_55 = arith.constant dense<0.000000e+00> : vector<16xf32>
    %171 = vector.multi_reduction <add>, %170, %cst_55 [1] : vector<16x16xf32> to vector<16xf32>
    %172 = vector.shape_cast %171 : vector<16xf32> to vector<16x1xf32>
    %173 = tpu.reciprocal %172 {approx = true} : vector<16x1xf32> -> vector<16x1xf32>
    %174 = vector.broadcast %173 : vector<16x1xf32> to vector<16x16xf32>
    %175 = arith.mulf %170, %174 : vector<16x16xf32>
    %cst_56 = arith.constant dense<0.000000e+00> : vector<16x8xf32>
    %176 = tpu.matmul %175, %160, %cst_56 {dimension_numbers = #tpu.dot_dimension_numbers<[1], [0], [0], [1], [0, 0, 1, 1], [], []>} : vector<16x16xf32>, vector<16x8xf32>, vector<16x8xf32> -> vector<16x8xf32>
    %177 = vector.extract_strided_slice %36 {offsets = [16, 24], sizes = [16, 8], strides = [1, 1]} : vector<32x96xf32> to vector<16x8xf32>
    %178 = vector.extract_strided_slice %36 {offsets = [16, 56], sizes = [16, 8], strides = [1, 1]} : vector<32x96xf32> to vector<16x8xf32>
    %179 = vector.extract_strided_slice %36 {offsets = [16, 88], sizes = [16, 8], strides = [1, 1]} : vector<32x96xf32> to vector<16x8xf32>
    %cst_57 = arith.constant dense<0.000000e+00> : vector<16x16xf32>
    %180 = tpu.matmul %177, %178, %cst_57 {dimension_numbers = #tpu.dot_dimension_numbers<[1], [1], [0], [0], [0, 0, 1, 0], [], []>} : vector<16x8xf32>, vector<16x8xf32>, vector<16x16xf32> -> vector<16x16xf32>
    %cst_58 = arith.constant 0.353553385 : f32
    %181 = vector.broadcast %cst_58 : f32 to vector<16x16xf32>
    %182 = arith.mulf %180, %181 : vector<16x16xf32>
    %183 = vector.broadcast %119 : vector<1x16xf32> to vector<16x16xf32>
    %184 = arith.addf %182, %183 : vector<16x16xf32>
    %cst_59 = arith.constant dense<0xFF800000> : vector<16xf32>
    %185 = vector.multi_reduction <maximumf>, %184, %cst_59 [1] : vector<16x16xf32> to vector<16xf32>
    %186 = vector.shape_cast %185 : vector<16xf32> to vector<16x1xf32>
    %187 = vector.broadcast %186 : vector<16x1xf32> to vector<16x16xf32>
    %188 = arith.subf %184, %187 : vector<16x16xf32>
    %189 = math.exp %188 : vector<16x16xf32>
    %cst_60 = arith.constant dense<0.000000e+00> : vector<16xf32>
    %190 = vector.multi_reduction <add>, %189, %cst_60 [1] : vector<16x16xf32> to vector<16xf32>
    %191 = vector.shape_cast %190 : vector<16xf32> to vector<16x1xf32>
    %192 = tpu.reciprocal %191 {approx = true} : vector<16x1xf32> -> vector<16x1xf32>
    %193 = vector.broadcast %192 : vector<16x1xf32> to vector<16x16xf32>
    %194 = arith.mulf %189, %193 : vector<16x16xf32>
    %cst_61 = arith.constant dense<0.000000e+00> : vector<16x8xf32>
    %195 = tpu.matmul %194, %179, %cst_61 {dimension_numbers = #tpu.dot_dimension_numbers<[1], [0], [0], [1], [0, 0, 1, 1], [], []>} : vector<16x16xf32>, vector<16x8xf32>, vector<16x8xf32> -> vector<16x8xf32>
    %196 = tpu.concatenate %138, %157, %176, %195 in 1 : vector<16x8xf32>, vector<16x8xf32>, vector<16x8xf32>, vector<16x8xf32> -> vector<16x32xf32>
    %197 = tpu.concatenate %116, %196 in 0 : vector<16x32xf32>, vector<16x32xf32> -> vector<32x32xf32>
    %c0_62 = arith.constant 0 : index
    %c0_63 = arith.constant 0 : index
    %c0_64 = arith.constant 0 : index
    %198 = vector.load %arg7[%c0_62, %c0_63, %c0_64] : memref<1x32x32xf32, #tpu.memory_space<vmem>>, vector<1x32x32xf32>
    %199 = vector.shape_cast %198 : vector<1x32x32xf32> to vector<32x32xf32>
    %cst_65 = arith.constant dense<0.000000e+00> : vector<32x32xf32>
    %200 = tpu.matmul %197, %199, %cst_65 {dimension_numbers = #tpu.dot_dimension_numbers<[1], [0], [0], [1], [0, 0, 1, 1], [], []>} : vector<32x32xf32>, vector<32x32xf32>, vector<32x32xf32> -> vector<32x32xf32>
    %c0_66 = arith.constant 0 : index
    %c0_67 = arith.constant 0 : index
    %c0_68 = arith.constant 0 : index
    %201 = vector.load %arg8[%c0_66, %c0_67, %c0_68] : memref<1x1x32xf32, #tpu.memory_space<vmem>>, vector<1x1x32xf32>
    %202 = vector.shape_cast %201 : vector<1x1x32xf32> to vector<1x32xf32>
    %203 = vector.broadcast %202 : vector<1x32xf32> to vector<32x32xf32>
    %204 = arith.addf %200, %203 : vector<32x32xf32>
    %205 = arith.addf %3, %204 : vector<32x32xf32>
    %c0_69 = arith.constant 0 : index
    %c0_70 = arith.constant 0 : index
    %c0_71 = arith.constant 0 : index
    %206 = vector.load %arg9[%c0_69, %c0_70, %c0_71] : memref<1x1x32xf32, #tpu.memory_space<vmem>>, vector<1x1x32xf32>
    %207 = vector.shape_cast %206 : vector<1x1x32xf32> to vector<1x32xf32>
    %c0_72 = arith.constant 0 : index
    %c0_73 = arith.constant 0 : index
    %c0_74 = arith.constant 0 : index
    %208 = vector.load %arg10[%c0_72, %c0_73, %c0_74] : memref<1x1x32xf32, #tpu.memory_space<vmem>>, vector<1x1x32xf32>
    %209 = vector.shape_cast %208 : vector<1x1x32xf32> to vector<1x32xf32>
    %cst_75 = arith.constant dense<0.000000e+00> : vector<32xf32>
    %210 = vector.multi_reduction <add>, %205, %cst_75 [1] : vector<32x32xf32> to vector<32xf32>
    %211 = vector.shape_cast %210 : vector<32xf32> to vector<32x1xf32>
    %cst_76 = arith.constant 3.200000e+01 : f32
    %212 = vector.broadcast %cst_76 : f32 to vector<32x1xf32>
    %213 = arith.divf %211, %212 : vector<32x1xf32>
    %214 = vector.broadcast %213 : vector<32x1xf32> to vector<32x32xf32>
    %215 = arith.subf %205, %214 : vector<32x32xf32>
    %216 = arith.mulf %215, %215 : vector<32x32xf32>
    %cst_77 = arith.constant dense<0.000000e+00> : vector<32xf32>
    %217 = vector.multi_reduction <add>, %216, %cst_77 [1] : vector<32x32xf32> to vector<32xf32>
    %218 = vector.shape_cast %217 : vector<32xf32> to vector<32x1xf32>
    %cst_78 = arith.constant 3.200000e+01 : f32
    %219 = vector.broadcast %cst_78 : f32 to vector<32x1xf32>
    %220 = arith.divf %218, %219 : vector<32x1xf32>
    %221 = vector.broadcast %213 : vector<32x1xf32> to vector<32x32xf32>
    %222 = arith.subf %205, %221 : vector<32x32xf32>
    %cst_79 = arith.constant 9.99999974E-6 : f32
    %223 = vector.broadcast %cst_79 : f32 to vector<32x1xf32>
    %224 = arith.addf %220, %223 : vector<32x1xf32>
    %225 = math.rsqrt %224 : vector<32x1xf32>
    %226 = vector.broadcast %225 : vector<32x1xf32> to vector<32x32xf32>
    %227 = arith.mulf %222, %226 : vector<32x32xf32>
    %228 = vector.broadcast %207 : vector<1x32xf32> to vector<32x32xf32>
    %229 = arith.mulf %227, %228 : vector<32x32xf32>
    %230 = vector.broadcast %209 : vector<1x32xf32> to vector<32x32xf32>
    %231 = arith.addf %229, %230 : vector<32x32xf32>
    %c0_80 = arith.constant 0 : index
    %c0_81 = arith.constant 0 : index
    %c0_82 = arith.constant 0 : index
    %232 = vector.load %arg11[%c0_80, %c0_81, %c0_82] : memref<1x32x64xf32, #tpu.memory_space<vmem>>, vector<1x32x64xf32>
    %233 = vector.shape_cast %232 : vector<1x32x64xf32> to vector<32x64xf32>
    %cst_83 = arith.constant dense<0.000000e+00> : vector<32x64xf32>
    %234 = tpu.matmul %231, %233, %cst_83 {dimension_numbers = #tpu.dot_dimension_numbers<[1], [0], [0], [1], [0, 0, 1, 1], [], []>} : vector<32x32xf32>, vector<32x64xf32>, vector<32x64xf32> -> vector<32x64xf32>
    %c0_84 = arith.constant 0 : index
    %c0_85 = arith.constant 0 : index
    %c0_86 = arith.constant 0 : index
    %235 = vector.load %arg12[%c0_84, %c0_85, %c0_86] : memref<1x1x64xf32, #tpu.memory_space<vmem>>, vector<1x1x64xf32>
    %236 = vector.shape_cast %235 : vector<1x1x64xf32> to vector<1x64xf32>
    %237 = vector.broadcast %236 : vector<1x64xf32> to vector<32x64xf32>
    %238 = arith.addf %234, %237 : vector<32x64xf32>
    %cst_87 = arith.constant 5.000000e-01 : f32
    %239 = vector.broadcast %cst_87 : f32 to vector<32x64xf32>
    %240 = arith.mulf %239, %238 : vector<32x64xf32>
    %cst_88 = arith.constant 0.707106769 : f32
    %241 = vector.broadcast %cst_88 : f32 to vector<32x64xf32>
    %242 = arith.mulf %238, %241 : vector<32x64xf32>
    %243 = math.absf %242 : vector<32x64xf32>
    %cst_89 = arith.constant 0.327591091 : f32
    %244 = vector.broadcast %cst_89 : f32 to vector<32x64xf32>
    %245 = arith.mulf %244, %243 : vector<32x64xf32>
    %cst_90 = arith.constant 1.000000e+00 : f32
    %246 = vector.broadcast %cst_90 : f32 to vector<32x64xf32>
    %247 = arith.addf %246, %245 : vector<32x64xf32>
    %cst_91 = arith.constant 1.000000e+00 : f32
    %248 = vector.broadcast %cst_91 : f32 to vector<32x64xf32>
    %249 = arith.divf %248, %247 : vector<32x64xf32>
    %cst_92 = arith.constant 1.06140542 : f32
    %250 = vector.broadcast %cst_92 : f32 to vector<32x64xf32>
    %251 = arith.mulf %250, %249 : vector<32x64xf32>
    %cst_93 = arith.constant -1.45315206 : f32
    %252 = vector.broadcast %cst_93 : f32 to vector<32x64xf32>
    %253 = arith.addf %251, %252 : vector<32x64xf32>
    %254 = arith.mulf %253, %249 : vector<32x64xf32>
    %cst_94 = arith.constant 1.42141378 : f32
    %255 = vector.broadcast %cst_94 : f32 to vector<32x64xf32>
    %256 = arith.addf %254, %255 : vector<32x64xf32>
    %257 = arith.mulf %256, %249 : vector<32x64xf32>
    %cst_95 = arith.constant -0.284496725 : f32
    %258 = vector.broadcast %cst_95 : f32 to vector<32x64xf32>
    %259 = arith.addf %257, %258 : vector<32x64xf32>
    %260 = arith.mulf %259, %249 : vector<32x64xf32>
    %cst_96 = arith.constant 0.254829586 : f32
    %261 = vector.broadcast %cst_96 : f32 to vector<32x64xf32>
    %262 = arith.addf %260, %261 : vector<32x64xf32>
    %263 = arith.mulf %262, %249 : vector<32x64xf32>
    %cst_97 = arith.constant 0.000000e+00 : f32
    %264 = vector.broadcast %cst_97 : f32 to vector<32x64xf32>
    %265 = arith.subf %264, %243 : vector<32x64xf32>
    %266 = arith.mulf %265, %243 : vector<32x64xf32>
    %267 = math.exp %266 : vector<32x64xf32>
    %268 = arith.mulf %263, %267 : vector<32x64xf32>
    %cst_98 = arith.constant 1.000000e+00 : f32
    %269 = vector.broadcast %cst_98 : f32 to vector<32x64xf32>
    %270 = arith.subf %269, %268 : vector<32x64xf32>
    %cst_99 = arith.constant 0.000000e+00 : f32
    %271 = vector.broadcast %cst_99 : f32 to vector<32x64xf32>
    %272 = arith.cmpf oge, %242, %271 : vector<32x64xf32>
    %cst_100 = arith.constant 0.000000e+00 : f32
    %273 = vector.broadcast %cst_100 : f32 to vector<32x64xf32>
    %274 = arith.subf %273, %270 : vector<32x64xf32>
    %275 = arith.select %272, %270, %274 : vector<32x64xi1>, vector<32x64xf32>
    %cst_101 = arith.constant 1.000000e+00 : f32
    %276 = vector.broadcast %cst_101 : f32 to vector<32x64xf32>
    %277 = arith.addf %276, %275 : vector<32x64xf32>
    %278 = arith.mulf %240, %277 : vector<32x64xf32>
    %c0_102 = arith.constant 0 : index
    %c0_103 = arith.constant 0 : index
    %c0_104 = arith.constant 0 : index
    %279 = vector.load %arg13[%c0_102, %c0_103, %c0_104] : memref<1x64x32xf32, #tpu.memory_space<vmem>>, vector<1x64x32xf32>
    %280 = vector.shape_cast %279 : vector<1x64x32xf32> to vector<64x32xf32>
    %cst_105 = arith.constant dense<0.000000e+00> : vector<32x32xf32>
    %281 = tpu.matmul %278, %280, %cst_105 {dimension_numbers = #tpu.dot_dimension_numbers<[1], [0], [0], [1], [0, 0, 1, 1], [], []>} : vector<32x64xf32>, vector<64x32xf32>, vector<32x32xf32> -> vector<32x32xf32>
    %c0_106 = arith.constant 0 : index
    %c0_107 = arith.constant 0 : index
    %c0_108 = arith.constant 0 : index
    %282 = vector.load %arg14[%c0_106, %c0_107, %c0_108] : memref<1x1x32xf32, #tpu.memory_space<vmem>>, vector<1x1x32xf32>
    %283 = vector.shape_cast %282 : vector<1x1x32xf32> to vector<1x32xf32>
    %284 = vector.broadcast %283 : vector<1x32xf32> to vector<32x32xf32>
    %285 = arith.addf %281, %284 : vector<32x32xf32>
    %286 = arith.addf %205, %285 : vector<32x32xf32>
    %c0_109 = arith.constant 0 : index
    %c0_110 = arith.constant 0 : index
    %287 = vector.load %arg17[%c0_109, %c0_110] : memref<32x32xf32, #tpu.memory_space<vmem>>, vector<32x32xf32>
    tpu.vector_store %arg17[%c0_109, %c0_110], %286 {strides = array<i32>} : memref<32x32xf32, #tpu.memory_space<vmem>>, vector<32x32xf32>,
    %c9_i32 = arith.constant 9 : i32
    %288 = arith.cmpi eq, %arg0, %c9_i32 : i32
    %289 = arith.extui %288 : i1 to i32
    %c0_i32_111 = arith.constant 0 : i32
    %290 = arith.cmpi ne, %289, %c0_i32_111 : i32
    scf.if %290 {
      %c0_112 = arith.constant 0 : index
      %c0_113 = arith.constant 0 : index
      %291 = vector.load %arg15[%c0_112, %c0_113] : memref<1x32xf32, #tpu.memory_space<vmem>>, vector<1x32xf32>
      %c0_114 = arith.constant 0 : index
      %c0_115 = arith.constant 0 : index
      %292 = vector.load %arg16[%c0_114, %c0_115] : memref<1x32xf32, #tpu.memory_space<vmem>>, vector<1x32xf32>
      %cst_116 = arith.constant dense<0.000000e+00> : vector<32xf32>
      %293 = vector.multi_reduction <add>, %286, %cst_116 [1] : vector<32x32xf32> to vector<32xf32>
      %294 = vector.shape_cast %293 : vector<32xf32> to vector<32x1xf32>
      %cst_117 = arith.constant 3.200000e+01 : f32
      %295 = vector.broadcast %cst_117 : f32 to vector<32x1xf32>
      %296 = arith.divf %294, %295 : vector<32x1xf32>
      %297 = vector.broadcast %296 : vector<32x1xf32> to vector<32x32xf32>
      %298 = arith.subf %286, %297 : vector<32x32xf32>
      %299 = arith.mulf %298, %298 : vector<32x32xf32>
      %cst_118 = arith.constant dense<0.000000e+00> : vector<32xf32>
      %300 = vector.multi_reduction <add>, %299, %cst_118 [1] : vector<32x32xf32> to vector<32xf32>
      %301 = vector.shape_cast %300 : vector<32xf32> to vector<32x1xf32>
      %cst_119 = arith.constant 3.200000e+01 : f32
      %302 = vector.broadcast %cst_119 : f32 to vector<32x1xf32>
      %303 = arith.divf %301, %302 : vector<32x1xf32>
      %304 = vector.broadcast %296 : vector<32x1xf32> to vector<32x32xf32>
      %305 = arith.subf %286, %304 : vector<32x32xf32>
      %cst_120 = arith.constant 9.99999974E-6 : f32
      %306 = vector.broadcast %cst_120 : f32 to vector<32x1xf32>
      %307 = arith.addf %303, %306 : vector<32x1xf32>
      %308 = math.rsqrt %307 : vector<32x1xf32>
      %309 = vector.broadcast %308 : vector<32x1xf32> to vector<32x32xf32>
      %310 = arith.mulf %305, %309 : vector<32x32xf32>
      %311 = vector.broadcast %291 : vector<1x32xf32> to vector<32x32xf32>
      %312 = arith.mulf %310, %311 : vector<32x32xf32>
      %313 = vector.broadcast %292 : vector<1x32xf32> to vector<32x32xf32>
      %314 = arith.addf %312, %313 : vector<32x32xf32>
      %c0_121 = arith.constant 0 : index
      %c0_122 = arith.constant 0 : index
      %315 = vector.load %arg17[%c0_121, %c0_122] : memref<32x32xf32, #tpu.memory_space<vmem>>, vector<32x32xf32>
      tpu.vector_store %arg17[%c0_121, %c0_122], %314 {strides = array<i32>} : memref<32x32xf32, #tpu.memory_space<vmem>>, vector<32x32xf32>,
    } else {
    }
    return
  }
  func.func @transform_0(%arg0: i32) -> (i32, i32) {
    %c0_i32 = arith.constant 0 : i32
    %c0_i32_0 = arith.constant 0 : i32
    %c0_i32_1 = arith.constant 0 : i32
    return %c0_i32, %c0_i32_0 : i32, i32
  }
  func.func @transform_1(%arg0: i32) -> (i32, i32) {
    %c0_i32 = arith.constant 0 : i32
    %c0_i32_0 = arith.constant 0 : i32
    %c0_i32_1 = arith.constant 0 : i32
    return %c0_i32, %c0_i32_0 : i32, i32
  }
  func.func @transform_2(%arg0: i32) -> (i32, i32, i32) {
    %c0_i32 = arith.constant 0 : i32
    %c0_i32_0 = arith.constant 0 : i32
    %c0_i32_1 = arith.constant 0 : i32
    return %arg0, %c0_i32, %c0_i32_0 : i32, i32, i32
  }
  func.func @transform_3(%arg0: i32) -> (i32, i32, i32) {
    %c0_i32 = arith.constant 0 : i32
    %c0_i32_0 = arith.constant 0 : i32
    %c0_i32_1 = arith.constant 0 : i32
    return %arg0, %c0_i32, %c0_i32_0 : i32, i32, i32
  }
  func.func @transform_4(%arg0: i32) -> (i32, i32, i32) {
    %c0_i32 = arith.constant 0 : i32
    %c0_i32_0 = arith.constant 0 : i32
    %c0_i32_1 = arith.constant 0 : i32
    return %arg0, %c0_i32, %c0_i32_0 : i32, i32, i32
  }
  func.func @transform_5(%arg0: i32) -> (i32, i32, i32) {
    %c0_i32 = arith.constant 0 : i32
    %c0_i32_0 = arith.constant 0 : i32
    %c0_i32_1 = arith.constant 0 : i32
    return %arg0, %c0_i32, %c0_i32_0 : i32, i32, i32
  }
  func.func @transform_6(%arg0: i32) -> (i32, i32, i32) {
    %c0_i32 = arith.constant 0 : i32
    %c0_i32_0 = arith.constant 0 : i32
    %c0_i32_1 = arith.constant 0 : i32
    return %arg0, %c0_i32, %c0_i32_0 : i32, i32, i32
  }
  func.func @transform_7(%arg0: i32) -> (i32, i32, i32) {
    %c0_i32 = arith.constant 0 : i32
    %c0_i32_0 = arith.constant 0 : i32
    %c0_i32_1 = arith.constant 0 : i32
    return %arg0, %c0_i32, %c0_i32_0 : i32, i32, i32
  }
  func.func @transform_8(%arg0: i32) -> (i32, i32, i32) {
    %c0_i32 = arith.constant 0 : i32
    %c0_i32_0 = arith.constant 0 : i32
    %c0_i32_1 = arith.constant 0 : i32
    return %arg0, %c0_i32, %c0_i32_0 : i32, i32, i32
  }
  func.func @transform_9(%arg0: i32) -> (i32, i32, i32) {
    %c0_i32 = arith.constant 0 : i32
    %c0_i32_0 = arith.constant 0 : i32
    %c0_i32_1 = arith.constant 0 : i32
    return %arg0, %c0_i32, %c0_i32_0 : i32, i32, i32
  }
  func.func @transform_10(%arg0: i32) -> (i32, i32, i32) {
    %c0_i32 = arith.constant 0 : i32
    %c0_i32_0 = arith.constant 0 : i32
    %c0_i32_1 = arith.constant 0 : i32
    return %arg0, %c0_i32, %c0_i32_0 : i32, i32, i32
  }
  func.func @transform_11(%arg0: i32) -> (i32, i32, i32) {
    %c0_i32 = arith.constant 0 : i32
    %c0_i32_0 = arith.constant 0 : i32
    %c0_i32_1 = arith.constant 0 : i32
    return %arg0, %c0_i32, %c0_i32_0 : i32, i32, i32
  }
  func.func @transform_12(%arg0: i32) -> (i32, i32, i32) {
    %c0_i32 = arith.constant 0 : i32
    %c0_i32_0 = arith.constant 0 : i32
    %c0_i32_1 = arith.constant 0 : i32
    return %arg0, %c0_i32, %c0_i32_0 : i32, i32, i32
  }
  func.func @transform_13(%arg0: i32) -> (i32, i32, i32) {
    %c0_i32 = arith.constant 0 : i32
    %c0_i32_0 = arith.constant 0 : i32
    %c0_i32_1 = arith.constant 0 : i32
    return %arg0, %c0_i32, %c0_i32_0 : i32, i32, i32
  }
  func.func @transform_14(%arg0: i32) -> (i32, i32) {
    %c0_i32 = arith.constant 0 : i32
    %c0_i32_0 = arith.constant 0 : i32
    %c0_i32_1 = arith.constant 0 : i32
    return %c0_i32, %c0_i32_0 : i32, i32
  }
  func.func @transform_15(%arg0: i32) -> (i32, i32) {
    %c0_i32 = arith.constant 0 : i32
    %c0_i32_0 = arith.constant 0 : i32
    %c0_i32_1 = arith.constant 0 : i32
    return %c0_i32, %c0_i32_0 : i32, i32
  }
  func.func @transform_16(%arg0: i32) -> (i32, i32) {
    %c0_i32 = arith.constant 0 : i32
    %c0_i32_0 = arith.constant 0 : i32
    %c0_i32_1 = arith.constant 0 : i32
    return %c0_i32, %c0_i32_0 : i32, i32
  }
}

</mosaic_0001>

<bundles_post_ra>
// kernel: tpu_custom_call.1
= control target key start
LH: loop header
LB: loop body
LE: loop exit
PB: predicated region body
PF: predicated region fallthrough
CT: control target
= control target key end

     0   :  { %s5370_s0 = inlined_call_operand.hbm [shape: f32[32,32], index: 0, kind: input, shape index: {}]   ;;  %s5371_s1 = inlined_call_operand.hbm [shape: f32[2,16], index: 1, kind: input, shape index: {}]   ;;  %s5372_s2 = inlined_call_operand.hbm [shape: f32[10,1,32], index: 2, kind: input, shape index: {}]   ;;  %s5373_s3 = inlined_call_operand.vmem [shape: f32[10,1,32], index: 3, kind: input, shape index: {}]   ;;  %s5374_s4 = inlined_call_operand.vmem [shape: f32[10,32,96], index: 4, kind: input, shape index: {}]   ;;  %s5375_s5 = inlined_call_operand.hbm [shape: f32[10,1,96], index: 5, kind: input, shape index: {}]   ;;  %s5376_s6 = inlined_call_operand.vmem [shape: f32[10,32,32], index: 6, kind: input, shape index: {}]   ;;  %s5377_s7 = inlined_call_operand.vmem [shape: f32[10,1,32], index: 7, kind: input, shape index: {}]   ;;  %s5378_s8 = inlined_call_operand.hbm [shape: f32[10,1,32], index: 8, kind: input, shape index: {}]   ;;  %s5379_s9 = inlined_call_operand.vmem [shape: f32[10,1,32], index: 9, kind: input, shape index: {}]   ;;  %s5380_s10 = inlined_call_operand.vmem [shape: f32[10,32,64], index: 10, kind: input, shape index: {}]   ;;  %s5381_s11 = inlined_call_operand.hbm [shape: f32[10,1,64], index: 11, kind: input, shape index: {}]   ;;  %s5382_s12 = inlined_call_operand.vmem [shape: f32[10,64,32], index: 12, kind: input, shape index: {}]   ;;  %s5383_s13 = inlined_call_operand.vmem [shape: f32[10,1,32], index: 13, kind: input, shape index: {}]   ;;  %s5384_s14 = inlined_call_operand.vmem [shape: f32[1,32], index: 14, kind: input, shape index: {}]   ;;  %s5385_s15 = inlined_call_operand.vmem [shape: f32[1,32], index: 15, kind: input, shape index: {}]   ;;  %s5386_s16 = inlined_call_operand.hbm [shape: f32[32,32], index: 16, kind: output, shape index: {}]  }
   0x1   :  { %5403 = sst [smem:[#allocation19_spill]] %s5370_s0 }
   0x2   :  { %5404 = sst [smem:[#allocation20_spill]] %s5371_s1 }
   0x3   :  { %5405 = sst [smem:[#allocation21_spill]] %s5372_s2 }
   0x4   :  { %5406 = sst [smem:[#allocation22_spill]] %s5374_s4 }
   0x5   :  { %5407 = sst [smem:[#allocation23_spill]] %s5375_s5 }
   0x6   :  { %5408 = sst [smem:[#allocation24_spill]] %s5376_s6 }
   0x7   :  { %5409 = sst [smem:[#allocation25_spill]] %s5380_s10 }
   0x8   :  { %5410 = sst [smem:[#allocation26_spill]] %s5382_s12 }
   0x9   :  { %5411 = sst [smem:[#allocation27_spill]] %s5383_s13 }
   0xa   :  { %5412 = sst [smem:[#allocation28_spill]] %s5384_s14 }
   0xb   :  { %5413 = sst [smem:[#allocation29_spill]] %s5385_s15 }
   0xc   :  { %5414 = sst [smem:[#allocation30_spill]] %s5386_s16 }
   0xd   :  { %21 = vsyncpa [#allocation3], 0 }
   0xe   :  { %22 = vsyncpa [#allocation6], 0 }
   0xf   :  { %23 = vsyncpa [#allocation4], 0  ;;  %s4641_s21 = smov 0   ;;  %s4643_s22 = smov 0  }
  0x10   :  { %s4645_s23 = smov 0   ;;  %s4647_s24 = smov 0  }
  0x11 LB: > { %5415 = sst [smem:[#allocation16_spill]] %s4526_s23  ;;  %s4660_s25 = sadd.s32 4294967295, %s4530_s24   ;;  %s4530_s24 = sphi %s4647_s24, %s5457_s24   ;;  %s4526_s23 = sphi %s4645_s23, %s5459_s23   ;;  %s4522_s22 = sphi %s4643_s22, %s5461_s22   ;;  %s4518_s21 = sphi %s4641_s21, %s5460_s21  }
  0x12   : > { %p91_p0 = scmp.ne.s32.totalorder %s4522_s22, %s4518_s21  ;;  %p5391_p1 = scmp.eq.s32.totalorder %s4660_s25, 0 }
  0x13   : > { %p3494_p2 = scmp.ge.s32.totalorder %s4530_s24, 1  ;;  %p451_p3 = scmp.lt.s32.totalorder %s4530_s24, 11 }
  0x14   : > { %p4669_p5 = por %p5391_p1, %p91_p0  ;;  %s4532_s28 = smov [#allocation2]  }
  0x15   : > { %p4673_p6 = pnand %p3494_p2, %p451_p3  ;;  %s463_s29 = sshll.u32 %s4532_s28, 4  ;;  %s464_s29 = int_to_ptr.vmem [resolvable:$true] %s463_s29 }
  0x16   : > { %s5416_s26 = scalar_select %p4669_p5, 1, 0 }
  0x17   : > { %s5417_s27 = scalar_select %p4673_p6, 1, 0 }
  0x18   : > { %p4015_p7 = pneg %p4673_p6  ;;  %s4686_s0 = sadd.s32 1, %s4530_s24  }
  0x19   : > { %5419 = sst [smem:[#allocation17_spill]] %s4686_s0  ;;  %s78_s17 = sadd.s32 1, %s4526_s23 }
  0x1a   : > { %p4681_p8 = pnand %p4015_p7, %p5391_p1  ;;  %s75_s18 = ssub.s32 %s4530_s24, %s4686_s0 }
  0x1b   : > { %s5420_s21 = sld [smem:[#allocation19_spill]] }
  0x1c   : > { %s5418_s30 = scalar_select %p4681_p8, 1, 0 }
  0x1d   : > { %p5396_p10 = pneg %p4681_p8 }
  0x21   : > { %s5421_s16 = smov %s5420_s21  ;;  %s4282_s15 = scalar_lea.hbm %s5420_s21, 512 }
  0x22   : > { %p4283_p9 = scmp.ne.s32.totalorder %s5421_s16, %s4282_s15  ;;  %p4289_p13 = scmp.lt.u32.totalorder %s4282_s15, %s5421_s16 }
  0x24   : > { %p4285_p11 = pnand %p5396_p10, %p4283_p9 }
  0x26   : > { %p4286_p12 = pneg %p4285_p11 }
  0x28   : > { %p4291_p0 = pnand %p4289_p13, %p4286_p12 }
  0x2a   : > { %4294 = shalt.err (!%p4291_p0)
}
  0x2b   : > { %s4295_s0 = scalar_lea.vmem %s464_s29, 512  ;;  %p4303_p4 = scmp.lt.s32.totalorder %s464_s29, %s464_s29 }
  0x2c   : > { %p4296_p2 = scmp.ne.s32.totalorder %s464_s29, %s4295_s0  ;;  %p4304_p1 = scmp.lt.s32.totalorder %s4295_s0, %s4295_s0 }
  0x2e   : > { %p4298_p3 = pnand %p4296_p2, %p5396_p10  ;;  %p4305_p5 = por %p4304_p1, %p4303_p4 }
  0x30   : > { %p4299_p7 = pneg %p4298_p3 }
  0x32   : > { %p4306_p6 = pnand %p4305_p5, %p4299_p7 }
  0x34   : > { %4309 = shalt.err (!%p4306_p6)
}
  0x35   : > { %s4533_s14 = smov 128   ;;  %s4534_s12 = smov 8  }
  0x36   : > { %4018 = dma.hbm_to_vmem [thread:$0]  (!%p4681_p8), %s5421_s16, 512, %s464_s29, [#allocation3], %s4533_s14, %s4533_s14, %s4534_s12  }
  0x37   : > { %p76_p9 = scmp.eq.s32.totalorder %s75_s18, 0  ;;  %p85_p1 = scmp.ne.s32.totalorder %s4526_s23, %s4522_s22 }
  0x38   : > { %p86_p4 = scmp.eq.s32.totalorder %s4530_s24, 0  ;;  %p4037_p5 = scmp.lt.s32.totalorder %s4530_s24, 10 }
  0x39   : > { %s4718_s0 = scalar_select %p76_p9, %s4526_s23, %s78_s17  }
  0x3a   : > { %p87_p6 = por %p86_p4, %p85_p1  ;;  %s494_s19 = sand.u32 1, %s4530_s24  }
  0x3b   : > { %5422 = sst [smem:[#allocation18_spill]] %s4718_s0  ;;  %s4722_s20 = sand.u32 1, %s4526_s23  }
  0x3c   : > { %s4725_s21 = sshll.u32 %s4530_s24, 4  ;;  %s5423_s2 = sld [smem:[#allocation21_spill]] }
  0x3d   : > { %s497_s17 = scalar_lea.vmem [#allocation7], %s4722_s20  ;;  %p4736_p11 = pnand %p4037_p5, %p87_p6 }
  0x3e   : > { %s504_s18 = sshll.u32 %s497_s17, 4  ;;  %s5425_s5 = sld [smem:[#allocation23_spill]]  ;;  %s4734_s18 = int_to_ptr.vmem [resolvable:$true] %s504_s18 }
  0x3f   : > { %s5424_s14 = scalar_select %p4736_p11, 1, 0 }
  0x40   : > { %s528_s13 = scalar_lea.vmem [#allocation8], %s4722_s20  ;;  %s4749_s28 = scalar_lea.sflag [#allocation3], %s494_s19 }
  0x41   : > { %s4747_s15 = sshll.u32 %s528_s13, 4  ;;  %p4755_p13 = pneg %p4736_p11  ;;  %s536_s15 = int_to_ptr.vmem [resolvable:$true] %s4747_s15 }
  0x42   : > { %s4731_s29 = scalar_lea.hbm %s5423_s2, %s4725_s21  ;;  %s4315_s0 = scalar_lea.hbm %s5423_s2, 160 }
  0x43   : > { %s4310_s16 = scalar_lea.hbm %s4731_s29, 16  ;;  %p4316_p3 = scmp.lt.u32.totalorder %s4731_s29, %s5423_s2 }
  0x44   : > { %s4744_s10 = scalar_lea.hbm %s5425_s5, %s4725_s21  ;;  %p4311_p12 = scmp.ne.s32.totalorder %s4731_s29, %s4310_s16 }
  0x45   : > { %s5426_s17 = scalar_select %p4755_p13, 1, 0 }
  0x46   : > { %p4313_p0 = pnand %p4755_p13, %p4311_p12  ;;  %p4317_p7 = scmp.lt.u32.totalorder %s4315_s0, %s4310_s16 }
  0x47   : > { %p4319_p1 = scmp.lt.u32.totalorder %s4310_s16, %s4731_s29 }
  0x48   : > { %p4314_p2 = pneg %p4313_p0  ;;  %p4318_p9 = por %p4317_p7, %p4316_p3 }
  0x4a   : > { %p4320_p4 = por %p4319_p1, %p4318_p9 }
  0x4c   : > { %p4321_p5 = pnand %p4320_p4, %p4314_p2 }
  0x4e   : > { %4324 = shalt.err (!%p4321_p5)
}
  0x4f   : > { %s4325_s19 = scalar_lea.vmem %s4734_s18, 16  ;;  %s4535_s24 = smov [#allocation7]  }
  0x50   : > { %p4326_p6 = scmp.ne.s32.totalorder %s4734_s18, %s4325_s19  ;;  %s4330_s12 = sshll.u32 %s4535_s24, 4  ;;  %s4331_s12 = int_to_ptr.vmem [resolvable:$false] %s4330_s12 }
  0x51   : > { %s4332_s23 = scalar_lea.vmem %s4331_s12, 32  ;;  %p4333_p10 = scmp.lt.s32.totalorder %s4734_s18, %s4331_s12 }
  0x52   : > { %p4328_p12 = pnand %p4326_p6, %p4755_p13  ;;  %p4334_p8 = scmp.lt.s32.totalorder %s4332_s23, %s4325_s19 }
  0x54   : > { %p4329_p0 = pneg %p4328_p12  ;;  %p4335_p3 = por %p4334_p8, %p4333_p10 }
  0x56   : > { %p4336_p7 = pnand %p4335_p3, %p4329_p0 }
  0x58   : > { %4339 = shalt.err (!%p4336_p7)
}
  0x59   : > { %4025 = dma.hbm_to_vmem [thread:$0]  (!%p4736_p11), %s4731_s29, 16, %s4734_s18, %s4749_s28  }
  0x5a   : > { %s4340_s16 = scalar_lea.hbm %s4744_s10, 16  ;;  %s4345_s19 = scalar_lea.hbm %s5425_s5, 160 }
  0x5b   : > { %p4341_p2 = scmp.ne.s32.totalorder %s4744_s10, %s4340_s16  ;;  %p4346_p10 = scmp.lt.u32.totalorder %s4744_s10, %s5425_s5 }
  0x5c   : > { %p4347_p1 = scmp.lt.u32.totalorder %s4345_s19, %s4340_s16  ;;  %p4349_p5 = scmp.lt.u32.totalorder %s4340_s16, %s4744_s10 }
  0x5d   : > { %p4343_p9 = pnand %p4341_p2, %p4755_p13 }
  0x5e   : > { %p4348_p4 = por %p4347_p1, %p4346_p10 }
  0x5f   : > { %p4344_p8 = pneg %p4343_p9 }
  0x60   : > { %p4350_p6 = por %p4349_p5, %p4348_p4 }
  0x62   : > { %p4351_p12 = pnand %p4350_p6, %p4344_p8 }
  0x64   : > { %4354 = shalt.err (!%p4351_p12)
}
  0x65   : > { %s4355_s29 = scalar_lea.vmem %s536_s15, 16  ;;  %s4536_s18 = smov [#allocation8]  }
  0x66   : > { %p4356_p0 = scmp.ne.s32.totalorder %s536_s15, %s4355_s29  ;;  %s4360_s23 = sshll.u32 %s4536_s18, 4  ;;  %s4361_s23 = int_to_ptr.vmem [resolvable:$false] %s4360_s23 }
  0x67   : > { %s4362_s0 = scalar_lea.vmem %s4361_s23, 32  ;;  %p4363_p2 = scmp.lt.s32.totalorder %s536_s15, %s4361_s23 }
  0x68   : > { %p4358_p3 = pnand %p4356_p0, %p4755_p13  ;;  %p4364_p9 = scmp.lt.s32.totalorder %s4362_s0, %s4355_s29 }
  0x6a   : > { %p4359_p7 = pneg %p4358_p3  ;;  %p4365_p11 = por %p4364_p9, %p4363_p2 }
  0x6c   : > { %p4366_p1 = pnand %p4365_p11, %p4359_p7 }
  0x6e   : > { %4369 = shalt.err (!%p4366_p1)
}
  0x6f   : > { %p5427_p10 = scmp.ne.s32.totalorder %s5424_s14, 0  ;;  %s4802_s19 = scalar_lea.hbm %s5378_s8, %s4725_s21 }
  0x70   : > { %s559_s24 = scalar_lea.vmem [#allocation9], %s4722_s20  ;;  %s4370_s29 = scalar_lea.hbm %s4802_s19, 16 }
  0x71   : > { %4028 = dma.hbm_to_vmem [thread:$0]  (!%p5427_p10), %s4744_s10, 16, %s536_s15, %s4749_s28  }
  0x72   : > { %s566_s12 = sshll.u32 %s559_s24, 4  ;;  %p4371_p11 = scmp.ne.s32.totalorder %s4802_s19, %s4370_s29  ;;  %s567_s12 = int_to_ptr.vmem [resolvable:$true] %s566_s12 }
  0x73   : > { %s4375_s10 = scalar_lea.hbm %s5378_s8, 160  ;;  %p4376_p5 = scmp.lt.u32.totalorder %s4802_s19, %s5378_s8 }
  0x74   : > { %p4373_p8 = pnand %p4371_p11, %p4755_p13  ;;  %p4377_p6 = scmp.lt.u32.totalorder %s4375_s10, %s4370_s29 }
  0x75   : > { %p4379_p0 = scmp.lt.u32.totalorder %s4370_s29, %s4802_s19 }
  0x76   : > { %p4374_p4 = pneg %p4373_p8  ;;  %p4378_p12 = por %p4377_p6, %p4376_p5 }
  0x78   : > { %p4380_p3 = por %p4379_p0, %p4378_p12 }
  0x7a   : > { %p4381_p7 = pnand %p4380_p3, %p4374_p4 }
  0x7c   : > { %4384 = shalt.err (!%p4381_p7)
}
  0x7d   : > { %s4385_s16 = scalar_lea.vmem %s567_s12, 16  ;;  %s4537_s13 = smov [#allocation9]  }
  0x7e   : > { %p4386_p2 = scmp.ne.s32.totalorder %s567_s12, %s4385_s16  ;;  %s4390_s24 = sshll.u32 %s4537_s13, 4  ;;  %s4391_s24 = int_to_ptr.vmem [resolvable:$false] %s4390_s24 }
  0x7f   : > { %s4392_s18 = scalar_lea.vmem %s4391_s24, 32  ;;  %p4393_p11 = scmp.lt.s32.totalorder %s567_s12, %s4391_s24 }
  0x80   : > { %p4388_p9 = pnand %p4386_p2, %p4755_p13  ;;  %p4394_p8 = scmp.lt.s32.totalorder %s4392_s18, %s4385_s16 }
  0x82   : > { %p4389_p1 = pneg %p4388_p9  ;;  %p4395_p10 = por %p4394_p8, %p4393_p11 }
  0x84   : > { %p4396_p5 = pnand %p4395_p10, %p4389_p1 }
  0x86   : > { %4399 = shalt.err (!%p4396_p5)
}
  0x87   : > { %p5428_p6 = scmp.ne.s32.totalorder %s5424_s14, 0  ;;  %s4538_s29 = smov [#allocation5]  }
  0x88   : > { %s477_s23 = sshll.u32 %s4538_s29, 4  ;;  %s4827_s0 = scalar_lea.hbm %s5381_s11, %s4725_s21  ;;  %s478_s23 = int_to_ptr.vmem [resolvable:$true] %s477_s23 }
  0x89   : > { %4031 = dma.hbm_to_vmem [thread:$0]  (!%p5428_p6), %s4802_s19, 16, %s567_s12, %s4749_s28  }
  0x8a   : > { %s5429_s1 = sld [smem:[#allocation20_spill]]  ;;  %p5430_p4 = scmp.ne.s32.totalorder %s5418_s30, 0 }
  0x8c   : > { %p5431_p12 = pneg %p5430_p4 }
  0x90   : > { %s4400_s24 = scalar_lea.hbm %s5429_s1, 32 }
  0x91   : > { %p4401_p10 = scmp.ne.s32.totalorder %s5429_s1, %s4400_s24  ;;  %p4407_p7 = scmp.lt.u32.totalorder %s4400_s24, %s5429_s1 }
  0x93   : > { %p4403_p0 = pnand %p4401_p10, %p5431_p12 }
  0x95   : > { %p4404_p3 = pneg %p4403_p0 }
  0x97   : > { %p4409_p2 = pnand %p4407_p7, %p4404_p3 }
  0x99   : > { %4412 = shalt.err (!%p4409_p2)
}
  0x9a   : > { %s4413_s21 = scalar_lea.vmem %s478_s23, 32  ;;  %p5432_p1 = pmov %p5431_p12 }
  0x9b   : > { %p4414_p9 = scmp.ne.s32.totalorder %s478_s23, %s4413_s21  ;;  %p4421_p5 = scmp.lt.s32.totalorder %s478_s23, %s478_s23 }
  0x9c   : > { %p4422_p6 = scmp.lt.s32.totalorder %s4413_s21, %s4413_s21 }
  0x9d   : > { %p4416_p11 = pnand %p4414_p9, %p5432_p1 }
  0x9e   : > { %p4423_p13 = por %p4422_p6, %p4421_p5 }
  0x9f   : > { %p4417_p8 = pneg %p4416_p11 }
  0xa1   : > { %p4424_p10 = pnand %p4423_p13, %p4417_p8 }
  0xa3   : > { %4427 = shalt.err (!%p4424_p10)
}
  0xa4   : > { %4021 = dma.hbm_to_vmem [thread:$0]  (!%p5430_p4), %s5429_s1, 32, %s478_s23, [#allocation6]  }
  0xa5   : > { %s590_s10 = scalar_lea.vmem [#allocation10], %s4722_s20  ;;  %s4428_s13 = scalar_lea.hbm %s4827_s0, 16 }
  0xa6   : > { %s597_s15 = sshll.u32 %s590_s10, 4  ;;  %p4429_p12 = scmp.ne.s32.totalorder %s4827_s0, %s4428_s13  ;;  %s598_s15 = int_to_ptr.vmem [resolvable:$true] %s597_s15 }
  0xa7   : > { %p5433_p6 = scmp.ne.s32.totalorder %s5426_s17, 0  ;;  %s4433_s24 = scalar_lea.hbm %s5381_s11, 160 }
  0xa8   : > { %p4434_p3 = scmp.lt.u32.totalorder %s4827_s0, %s5381_s11  ;;  %p4435_p7 = scmp.lt.u32.totalorder %s4433_s24, %s4428_s13 }
  0xa9   : > { %p4431_p13 = pnand %p4429_p12, %p5433_p6  ;;  %p4437_p9 = scmp.lt.u32.totalorder %s4428_s13, %s4827_s0 }
  0xaa   : > { %p4436_p2 = por %p4435_p7, %p4434_p3 }
  0xab   : > { %p4432_p0 = pneg %p4431_p13 }
  0xac   : > { %p4438_p4 = por %p4437_p9, %p4436_p2 }
  0xae   : > { %p4439_p1 = pnand %p4438_p4, %p4432_p0 }
  0xb0   : > { %4442 = shalt.err (!%p4439_p1)
}
  0xb1   : > { %s4443_s20 = scalar_lea.vmem %s598_s15, 16  ;;  %s4539_s23 = smov [#allocation10]  }
  0xb2   : > { %p4444_p11 = scmp.ne.s32.totalorder %s598_s15, %s4443_s20  ;;  %s4448_s12 = sshll.u32 %s4539_s23, 4  ;;  %s4449_s12 = int_to_ptr.vmem [resolvable:$false] %s4448_s12 }
  0xb3   : > { %s4450_s21 = scalar_lea.vmem %s4449_s12, 32  ;;  %p4451_p10 = scmp.lt.s32.totalorder %s598_s15, %s4449_s12 }
  0xb4   : > { %p4446_p8 = pnand %p4444_p11, %p5433_p6  ;;  %p4452_p12 = scmp.lt.s32.totalorder %s4450_s21, %s4443_s20 }
  0xb6   : > { %p4447_p5 = pneg %p4446_p8  ;;  %p4453_p13 = por %p4452_p12, %p4451_p10 }
  0xb8   : > { %p4454_p3 = pnand %p4453_p13, %p4447_p5 }
  0xba   : > { %4457 = shalt.err (!%p4454_p3)
}
  0xbb   : > { %p5434_p7 = scmp.ne.s32.totalorder %s5424_s14, 0  ;;  %p5435_p0 = scmp.ne.s32.totalorder %s5417_s27, 0 }
  0xbc   : > { %p5436_p6 = scmp.eq.s32.totalorder (!%p5435_p0), %s4660_s25, 0 }
  0xbd   : > { %4034 = dma.hbm_to_vmem [thread:$0]  (!%p5434_p7), %s4827_s0, 16, %s598_s15, %s4749_s28  }
  0xbe   : > { %620 = sbr.rel (%p5435_p0) target bundleno = 5885 (0x16fd), region = 84 }
  0xc5   : > { %4501 = dma.done.wait (%p5436_p6), [#allocation3], 512   ;;  %p5437_p2 = pmov %p5436_p6 }
  0xc7   : > { %4503 = vsyncadd (%p5437_p2), [#allocation3], 4294966784  ;;  %p5438_p9 = pmov %p5437_p2 }
  0xc8   : > { %p5439_p4 = pmov %p5437_p2 }
  0xc9   : > { %4505 = dma.done.wait (%p5438_p9), [#allocation6], 32  }
  0xca   : > { %4507 = vsyncadd (%p5439_p4), [#allocation6], 4294967264  ;;  %s630_s14 = sand.u32 1, %s4660_s25   ;;  %s4880_s28 = sand.u32 1, %s4522_s22  }
  0xcb   : > { %s631_s27 = scalar_lea.sflag [#allocation3], %s630_s14  ;;  %p5440_p1 = scmp.ne.s32.totalorder %s5416_s26, 0 }
  0xcd   : > { %4509 = dma.done.wait (%p5440_p1), %s631_s27, 64  }
  0xce   : > { %4511 = vsyncadd (%p5440_p1), %s631_s27, 4294967232  ;;  %p744_p11 = scmp.lt.s32.totalorder %s4660_s25, 9  ;;  %s5441_s4 = sld [smem:[#allocation22_spill]] }
  0xcf   : > { %s5442_s6 = sld [smem:[#allocation24_spill]]  ;;  %s5443_s29 = sld [smem:[#allocation25_spill]] }
  0xd0   : > { %s4889_s0 = scalar_select %p744_p11, %s4660_s25, 9 }
  0xd1   : > { %s5444_s1 = sld [smem:[#allocation26_spill]]  ;;  %s5445_s5 = sld [smem:[#allocation27_spill]] }
  0xd2   : > { %s3595_s26 = sshll.u32 %s4889_s0, 5  ;;  %s762_s14 = scalar_lea.vmem %s5379_s9, %s4889_s0 }
  0xd3   : > { %s3598_s15 = sshll.u32 %s4889_s0, 6  ;;  %s641_s20 = scalar_lea.vmem [#allocation8], %s4880_s28 }
  0xd4   : > { %s4899_s16 = scalar_lea.vmem %s5441_s4, %s3595_s26  ;;  %s649_s23 = scalar_lea.vmem [#allocation9], %s4880_s28 }
  0xd5   : > { %s4904_s18 = scalar_lea.vmem %s5442_s6, %s3595_s26  ;;  %s4917_s10 = scalar_lea.vmem %s5443_s29, %s3595_s26 }
  0xd6   : > { %s657_s6 = scalar_lea.vmem [#allocation10], %s4880_s28  ;;  %p5446_p8 = scmp.ne.s32.totalorder %s4660_s25, 0 }
  0xd7   : > { %s4923_s30 = scalar_lea.vmem %s5444_s1, %s3598_s15  ;;  %s775_s19 = scalar_lea.vmem %s5445_s5, %s4889_s0  ;;  %v780_v0 = vld [vmem:[#allocation2] sm:$0xff] (!%p5446_p8)  ;;  %vm784_vm0 = vcmask (!%p5446_p8), 261120   ;;  %v781_v1 = vld [vmem:[#allocation2 + $0x8] sm:$0xff] (!%p5446_p8)  ;;  %v782_v2 = vld [vmem:[#allocation2 + $0x10] sm:$0xff] (!%p5446_p8) }
  0xd8   : > { %779 = sbr.rel (%p5446_p8) target bundleno = 223 (0xdf), region = 112  ;;  %785 = vst.msk [vmem:[#allocation11] sm:$0xff] (!%p5446_p8), %vm784_vm0, %v780_v0  ;;  %786 = vst.msk [vmem:[#allocation11 + $0x8] sm:$0xff] (!%p5446_p8), %vm784_vm0, %v781_v1  ;;  %v783_v3 = vld [vmem:[#allocation2 + $0x18] sm:$0xff] (!%p5446_p8) }
  0xd9   : > { %787 = vst.msk [vmem:[#allocation11 + $0x10] sm:$0xff] (!%p5446_p8), %vm784_vm0, %v782_v2  ;;  %788 = vst.msk [vmem:[#allocation11 + $0x18] sm:$0xff] (!%p5446_p8), %vm784_vm0, %v783_v3 }
  0xdf PF: > { %v789_v4 = vld [vmem:[#allocation11] sm:$0xff]  ;;  %vm795_vm1 = vcmask 261120   ;;  %v790_v5 = vld [vmem:[#allocation11 + $0x8] sm:$0xff]  ;;  %v869_v22 = vld [vmem:[%s4899_s16] sm:$0xff]  ;;  %s5447_s1 = scalar_lea.vmem [#allocation7], %s4880_s28  ;;  %s5448_s17 = scalar_lea.vmem %s5373_s3, %s4889_s0  ;;  %vm984_vm2 = vcmask 64512  }
  0xe0   : > { %v796_v6 = vsel %vm795_vm1, %v789_v4, 0.0  ;;  %v799_v7 = vsel %vm795_vm1, %v790_v5, 0.0  ;;  %v791_v8 = vld [vmem:[#allocation11 + $0x10] sm:$0xff]  ;;  %v792_v19 = vld [vmem:[#allocation11 + $0x18] sm:$0xff]  ;;  %v871_v24 = vld [vmem:[%s4899_s16 + $0x10] sm:$0xff]  ;;  %s4540_s26 = smov 88  }
  0xe1   : > { %797 = vadd.xlane.f32.xlu0 %v796_v6  ;;  %v802_v9 = vsel %vm795_vm1, %v791_v8, 0.0  ;;  %v805_v21 = vsel %vm795_vm1, %v792_v19, 0.0  ;;  %v870_v23 = vld [vmem:[%s4899_s16 + $0x8] sm:$0xff]  ;;  %v872_v26 = vld [vmem:[%s4899_s16 + $0x18] sm:$0xff]  ;;  %v3514_v44 = vld [vmem:[%s5447_s1] ss:$0 sm:$0xff] }
  0xe2   : > { %v3875_v25 = vpack.c.bf16 %v870_v23, %v869_v22  ;;  %v3879_v27 = vpack.c.bf16 %v872_v26, %v871_v24  ;;  %v3515_v47 = vld [vmem:[%s5448_s17] ss:$0 sm:$0xff]  ;;  %s4541_s16 = smov 96   ;;  %s4542_s12 = smov 120   ;;  %vm4989_vm3 = vmpackc.low %vm984_vm2, %vm984_vm2  ;;  %vm1076_vm4 = vcmask 130048   ;;  %vm1826_vm5 = vcmask 195584  }
  0xe3   : > { %s4543_s21 = smov 80   ;;  %s4544_s27 = smov 112   ;;  %vm3095_vm8 = vcmask 523264  }
  0xe4   : > { %3876 = vmatprep.subr.bf16.mxu1 %v3875_v25  ;;  %s4545_s2 = smov 64   ;;  %s4546_s29 = smov 48  }
  0xe5   : > { %800 = vadd.xlane.f32.xlu0 %v799_v7  ;;  %3878 = vmatpush3.bf16.msra.mxu1 %v3875_v25  ;;  %s4547_s15 = smov 72   ;;  %s4548_s13 = smov 56  }
  0xe6   : > { %3880 = vmatprep.subr.bf16.mxu1 %v3879_v27  ;;  %s4549_s24 = smov 104   ;;  %s4551_s1 = smov 8  }
  0xe7   : > { %s4552_s4 = smov 16   ;;  %s4553_s5 = smov 24  }
  0xe8   : > { %p3588_p5 = scmp.ne.s32.totalorder %s4660_s25, 9 }
  0xe9   : > { %803 = vadd.xlane.f32.xlu0 %v802_v9  ;;  %3882 = vmatpush3.bf16.msra.mxu1 %v3879_v27 }
 0x16e   : > { %v798_v10 = vpop.xlane.xlu0 %797 }
 0x16f   : > { %v809_v11 = vmul.f32 0.03125, %v798_v10 }
 0x171   : > { %v813_v12 = vsub.f32 %v789_v4, %v809_v11  ;;  %v4959_v4 = vld [vmem:[%s641_s20] ss:$0 sm:$0xff]  ;;  %s4550_s20 = smov 40  }
 0x172   : > { %v801_v13 = vpop.xlane.xlu0 %800 }
 0x173   : > { %v810_v14 = vmul.f32 0.03125, %v801_v13  ;;  %v817_v15 = vmul.f32 %v813_v12, %v813_v12 }
 0x175   : > { %v814_v16 = vsub.f32 %v790_v5, %v810_v14  ;;  %v821_v17 = vsel %vm795_vm1, %v817_v15, 0.0 }
 0x176   : > { %822 = vadd.xlane.f32.xlu1 %v821_v17  ;;  %v804_v28 = vpop.xlane.xlu0 %803 }
 0x177   : > { %v818_v18 = vmul.f32 %v814_v16, %v814_v16  ;;  %v811_v29 = vmul.f32 0.03125, %v804_v28 }
 0x179   : > { %v824_v20 = vsel %vm795_vm1, %v818_v18, 0.0  ;;  %v815_v30 = vsub.f32 %v791_v8, %v811_v29 }
 0x17a   : > { %825 = vadd.xlane.f32.xlu1 %v824_v20 }
 0x17b   : > { %v819_v31 = vmul.f32 %v815_v30, %v815_v30 }
 0x17d   : > { %v827_v32 = vsel %vm795_vm1, %v819_v31, 0.0 }
 0x17e   : > { %806 = vadd.xlane.f32.xlu1 %v805_v21  ;;  %828 = vadd.xlane.f32.xlu0 %v827_v32 }
 0x203   : > { %v823_v33 = vpop.xlane.xlu1 %822 }
 0x204   : > { %v833_v34 = vmul.f32 0.03125, %v823_v33 }
 0x206   : > { %v837_v35 = vadd.f32 1e-05, %v833_v34 }
 0x207   : > { %v826_v36 = vpop.xlane.xlu1 %825 }
 0x208   : > { %4174 = vrsqrt.f32 %v837_v35  ;;  %v834_v37 = vmul.f32 0.03125, %v826_v36 }
 0x20a   : > { %v838_v38 = vadd.f32 1e-05, %v834_v37 }
 0x20b   : > { %v807_v39 = vpop.xlane.xlu1 %806  ;;  %v829_v54 = vpop.xlane.xlu0 %828 }
 0x20c   : > { %4176 = vrsqrt.f32 %v838_v38  ;;  %v812_v40 = vmul.f32 0.03125, %v807_v39  ;;  %v835_v55 = vmul.f32 0.03125, %v829_v54 }
 0x20e   : > { %v816_v41 = vsub.f32 %v792_v19, %v812_v40  ;;  %v839_v56 = vadd.f32 1e-05, %v835_v55 }
 0x210   : > { %v820_v42 = vmul.f32 %v816_v41, %v816_v41  ;;  %4178 = vrsqrt.f32 %v839_v56 }
 0x212   : > { %v4175_v43 = vpop.eup %4174  ;;  %v830_v45 = vsel %vm795_vm1, %v820_v42, 0.0 }
 0x213   : > { %v845_v46 = vmul.f32 %v4175_v43, %v813_v12  ;;  %831 = vadd.xlane.f32.xlu1 %v830_v45 }
 0x215   : > { %v855_v48 = vmul.f32 %v3514_v44, %v845_v46 }
 0x216   : > { %v4177_v49 = vpop.eup %4176 }
 0x217   : > { %v865_v50 = vadd.f32 %v3515_v47, %v855_v48  ;;  %v846_v51 = vmul.f32 %v4177_v49, %v814_v16 }
 0x219   : > { %3707 = vmatprep.mubr.msk.f32.mxu1 %vm795_vm1, %v865_v50  ;;  %v856_v52 = vmul.f32 %v3514_v44, %v846_v51 }
 0x21a   : > { %v4179_v57 = vpop.eup %4178 }
 0x21b   : > { %v866_v53 = vadd.f32 %v3515_v47, %v856_v52  ;;  %v847_v58 = vmul.f32 %v4179_v57, %v815_v30  ;;  %v5015_v30 = vld [vmem:[#allocation5] ss:$0 sm:$0xff] }
 0x21d   : > { %3708 = vmatmul.mubr.msk.f32.vlgmr.msra.gmra.mrb[0].mxu1 %vm795_vm1, %v866_v53  ;;  %v857_v59 = vmul.f32 %v3514_v44, %v847_v58 }
 0x21f   : > { %v867_v60 = vadd.f32 %v3515_v47, %v857_v59 }
 0x221   : > { %3710 = vmatprep.mubr.msk.f32.mxu1 %vm795_vm1, %v867_v60 }
 0x2a0   : > { %v832_v61 = vpop.xlane.xlu1 %831 }
 0x2a1   : > { %v836_v62 = vmul.f32 0.03125, %v832_v61 }
 0x2a3   : > { %v840_v63 = vadd.f32 1e-05, %v836_v62 }
 0x2a5   : > { %4180 = vrsqrt.f32 %v840_v63 }
 0x2af   : > { %v4181_v0 = vpop.eup %4180 }
 0x2b0   : > { %v848_v1 = vmul.f32 %v4181_v0, %v816_v41 }
 0x2b2   : > { %v858_v2 = vmul.f32 %v3514_v44, %v848_v1 }
 0x2b4   : > { %v868_v3 = vadd.f32 %v3515_v47, %v858_v2 }
 0x2b6   : > { %3711 = vmatmul.mubr.msk.f32.gmra.mrb[2].mxu1 %vm795_vm1, %v868_v3 }
 0x2f0   : > { %v3709_v5 = vpop.f32.mrb[0].mxu1 }
 0x2f1   : > { %v4962_v6 = vadd.f32 %v3709_v5, %v4959_v4  ;;  %v958_v7 = vpop.f32.mrb[1].mxu1 }
 0x2f2   : > { %v4965_v8 = vadd.f32 %v4959_v4, %v958_v7 }
 0x2f4   : > { %3717 = vmatprep.mubr.msk.f32.mxu1 %vm984_vm2, %v4965_v8  ;;  %v4971_v9 = vpack.i.bf16 %v4962_v6, %v4965_v8 }
 0x2f6   : > { %4100 = vrot.lane.b32.xlu1 %v4971_v9, %s4540_s26  ;;  %4095 = vrot.lane.b32.xlu0 %v4971_v9, %s4541_s16 }
 0x2fa   : > { %1186 = vrot.lane.b32.xlu1 %v4965_v8, %s4542_s12  ;;  %1188 = vrot.lane.b32.xlu0 %v4962_v6, %s4542_s12 }
 0x2fe   : > { %4105 = vrot.lane.b32.xlu1 %v4971_v9, %s4543_s21  ;;  %1392 = vrot.lane.b32.xlu0 %v4962_v6, %s4544_s27 }
 0x302   : > { %1390 = vrot.lane.b32.xlu1 %v4965_v8, %s4544_s27 }
 0x368   : > { %v4101_v10 = vpop.permute.xlu1 %4100  ;;  %v4096_v11 = vpop.permute.xlu0 %4095 }
 0x369   : > { %v4103_v12 = vunpack.i.h.bf16 %v4101_v10  ;;  %v4102_v13 = vunpack.i.l.bf16 %v4101_v10  ;;  %v4098_v14 = vunpack.i.h.bf16 %v4096_v11  ;;  %v4097_v15 = vunpack.i.l.bf16 %v4096_v11 }
 0x36b   : > { %v3883_v17 = vpack.c.bf16 %v4098_v14, %v4097_v15  ;;  %v3893_v18 = vpack.c.bf16 %v4103_v12, %v4102_v13 }
 0x36c   : > { %v1187_v19 = vpop.permute.xlu1 %1186  ;;  %v1189_v25 = vpop.permute.xlu0 %1188 }
 0x36d   : > { %3885 = vmatprep.subr.msk.bf16.mxu1 %vm4989_vm3, %v3883_v17  ;;  %3895 = vmatprep.subr.msk.bf16.mxu0 %vm4989_vm3, %v3893_v18 }
 0x36e   : > { %3731 = vmatprep.mubr.msk.f32.mxu0 %vm984_vm2, %v1187_v19  ;;  %3888 = vmatpush3.bf16.xpose.msk.msra.mxu1 %vm4989_vm3, %v3883_v17 }
 0x36f   : > { %3898 = vmatpush3.bf16.xpose.msk.msra.mxu0 %vm4989_vm3, %v3893_v18 }
 0x370   : > { %v4106_v20 = vpop.permute.xlu1 %4105  ;;  %v1393_v26 = vpop.permute.xlu0 %1392 }
 0x371   : > { %v4108_v21 = vunpack.i.h.bf16 %v4106_v20  ;;  %v4107_v22 = vunpack.i.l.bf16 %v4106_v20 }
 0x373   : > { %v3903_v23 = vpack.c.bf16 %v4108_v21, %v4107_v22 }
 0x374   : > { %v1391_v24 = vpop.permute.xlu1 %1390 }
 0x375   : > { %3718 = vmatmul.mubr.msk.f32.vlgmr.msra.gmra.mrb[4].mxu1 %vm984_vm2, %v4962_v6  ;;  %3905 = vmatprep.subr.msk.bf16.mxu0 %vm4989_vm3, %v3903_v23 }
 0x376   : > { %3732 = vmatmul.mubr.msk.f32.vlgmr.msra.gmra.mrb[0].mxu0 %vm984_vm2, %v1189_v25 }
 0x377   : > { %3908 = vmatpush3.bf16.xpose.msk.msra.mxu0 %vm4989_vm3, %v3903_v23  ;;  %3745 = vmatprep.mubr.msk.f32.mxu0 %vm984_vm2, %v1391_v24 }
 0x37e   : > { %3746 = vmatmul.mubr.msk.f32.vlgmr.msra.gmra.mrb[2].mxu0 %vm984_vm2, %v1393_v26 }
 0x389   : > { %v5011_v27 = vpop.f32.mrb[2].mxu1 }
 0x38a   : > { %v5013_v28 = vpop.f32.mrb[3].mxu1 }
 0x448   : > { %v3719_v29 = vpop.f32.mrb[4].mxu1 }
 0x449   : > { %v1069_v31 = vmul.f32 0.35355338, %v3719_v29  ;;  %v3733_v32 = vpop.f32.mrb[0].mxu0  ;;  %v1059_v33 = vpop.f32.mrb[5].mxu1 }
 0x44a   : > { %v1068_v34 = vmul.f32 0.35355338, %v1059_v33  ;;  %v1268_v35 = vpop.f32.mrb[1].mxu0  ;;  %v1278_v39 = vmul.f32 0.35355338, %v3733_v32 }
 0x44b   : > { %v1277_v36 = vmul.f32 0.35355338, %v1268_v35  ;;  %v1075_v37 = vadd.f32 %v5015_v30, %v1069_v31 }
 0x44c   : > { %v1074_v38 = vadd.f32 %v5015_v30, %v1068_v34  ;;  %v1280_v45 = vadd.f32 %v5015_v30, %v1278_v39 }
 0x44d   : > { %v1080_v40 = vsel %vm1076_vm4, %v1075_v37, -inf  ;;  %v1279_v41 = vadd.f32 %v5015_v30, %v1277_v36 }
 0x44e   : > { %1081 = vmax.xlane.f32.xlu0 %v1080_v40  ;;  %v1077_v42 = vsel %vm1076_vm4, %v1074_v38, -inf  ;;  %v1284_v49 = vsel %vm1076_vm4, %v1280_v45, -inf }
 0x44f   : > { %1078 = vmax.xlane.f32.xlu1 %v1077_v42  ;;  %v1281_v44 = vsel %vm1076_vm4, %v1279_v41, -inf }
 0x451   : > { %v3747_v43 = vpop.f32.mrb[2].mxu0 }
 0x452   : > { %v1482_v46 = vmul.f32 0.35355338, %v3747_v43  ;;  %v1472_v47 = vpop.f32.mrb[3].mxu0  ;;  %1282 = vmax.xlane.f32.xlu0 %v1281_v44 }
 0x453   : > { %v1481_v48 = vmul.f32 0.35355338, %v1472_v47 }
 0x454   : > { %v1484_v51 = vadd.f32 %v5015_v30, %v1482_v46 }
 0x455   : > { %v1483_v50 = vadd.f32 %v5015_v30, %v1481_v48 }
 0x456   : > { %1285 = vmax.xlane.f32.xlu0 %v1284_v49  ;;  %v1488_v53 = vsel %vm1076_vm4, %v1484_v51, -inf }
 0x457   : > { %v1485_v52 = vsel %vm1076_vm4, %v1483_v50, -inf }
 0x458   : > { %1486 = vmax.xlane.f32.xlu1 %v1485_v52 }
 0x45a   : > { %1489 = vmax.xlane.f32.xlu0 %v1488_v53 }
 0x469   : > { %4110 = vrot.lane.b32.xlu1 %v4971_v9, %s4545_s2 }
 0x4db   : > { %v1082_v54 = vpop.xlane.xlu0 %1081 }
 0x4dc   : > { %v1084_v55 = vsub.f32 %v1075_v37, %v1082_v54  ;;  %v1079_v56 = vpop.xlane.xlu1 %1078 }
 0x4dd   : > { %v1083_v57 = vsub.f32 %v1074_v38, %v1079_v56 }
 0x4de   : > { %v1087_v58 = vmul.f32 1.442695, %v1084_v55 }
 0x4df   : > { %v1085_v59 = vmul.f32 1.442695, %v1083_v57  ;;  %v1283_v60 = vpop.xlane.xlu0 %1282 }
 0x4e0   : > { %4182 = vpow2.f32 %v1087_v58  ;;  %v1287_v61 = vsub.f32 %v1279_v41, %v1283_v60 }
 0x4e1   : > { %4184 = vpow2.f32 %v1085_v59 }
 0x4e2   : > { %v1289_v62 = vmul.f32 1.442695, %v1287_v61 }
 0x4e3   : > { %v1286_v63 = vpop.xlane.xlu0 %1285 }
 0x4e4   : > { %4186 = vpow2.f32 %v1289_v62  ;;  %v1288_v0 = vsub.f32 %v1280_v45, %v1286_v63 }
 0x4e5   : > { %v1487_v1 = vpop.xlane.xlu1 %1486 }
 0x4e6   : > { %v1291_v2 = vmul.f32 1.442695, %v1288_v0  ;;  %v1491_v25 = vsub.f32 %v1483_v50, %v1487_v1 }
 0x4e7   : > { %v1490_v3 = vpop.xlane.xlu0 %1489 }
 0x4e8   : > { %4188 = vpow2.f32 %v1291_v2  ;;  %v1492_v5 = vsub.f32 %v1484_v51, %v1490_v3  ;;  %v1493_v26 = vmul.f32 1.442695, %v1491_v25 }
 0x4e9   : > { %v4111_v7 = vpop.permute.xlu1 %4110 }
 0x4ea   : > { %v4183_v10 = vpop.eup %4182  ;;  %v1495_v11 = vmul.f32 1.442695, %v1492_v5  ;;  %v4113_v12 = vunpack.i.h.bf16 %v4111_v7  ;;  %v4112_v13 = vunpack.i.l.bf16 %v4111_v7 }
 0x4eb   : > { %v4185_v14 = vpop.eup %4184  ;;  %v1092_v15 = vsel %vm1076_vm4, %v4183_v10, 0.0 }
 0x4ec   : > { %4190 = vpow2.f32 %v1495_v11  ;;  %v3889_v17 = vpack.c.bf16 %v4113_v12, %v4112_v13  ;;  %1093 = vadd.xlane.f32.xlu0 %v1092_v15  ;;  %v1089_v18 = vsel %vm1076_vm4, %v4185_v14, 0.0 }
 0x4ed   : > { %1090 = vadd.xlane.f32.xlu1 %v1089_v18  ;;  %4192 = vpow2.f32 %v1493_v26 }
 0x4ee   : > { %v4187_v19 = vpop.eup %4186  ;;  %3890 = vmatprep.subr.bf16.mxu1 %v3889_v17 }
 0x4ef   : > { %3892 = vmatpush3.bf16.msra.mxu1 %v3889_v17  ;;  %v1293_v20 = vsel %vm1076_vm4, %v4187_v19, 0.0 }
 0x4f1   : > { %1294 = vadd.xlane.f32.xlu1 %v1293_v20 }
 0x4f2   : > { %v4189_v21 = vpop.eup %4188 }
 0x4f3   : > { %v1296_v22 = vsel %vm1076_vm4, %v4189_v21, 0.0 }
 0x4f4   : > { %1297 = vadd.xlane.f32.xlu0 %v1296_v22 }
 0x4f6   : > { %v4191_v23 = vpop.eup %4190 }
 0x4f7   : > { %v1500_v24 = vsel %vm1076_vm4, %v4191_v23, 0.0  ;;  %v4193_v29 = vpop.eup %4192 }
 0x4f8   : > { %1501 = vadd.xlane.f32.xlu0 %v1500_v24  ;;  %v1497_v31 = vsel %vm1076_vm4, %v4193_v29, 0.0 }
 0x502   : > { %4120 = vrot.lane.b32.xlu1 %v4971_v9, %s4546_s29 }
 0x506   : > { %4125 = vrot.lane.b32.xlu1 %v4971_v9, %s4547_s15 }
 0x50e   : > { %4115 = vrot.lane.b32.xlu0 %v4971_v9, %s4548_s13 }
 0x512   : > { %1596 = vrot.lane.b32.xlu0 %v4962_v6, %s4549_s24 }
 0x52a   : > { %1498 = vadd.xlane.f32.xlu1 %v1497_v31 }
 0x53b   : > { %1594 = vrot.lane.b32.xlu1 %v4965_v8, %s4549_s24 }
 0x579   : > { %v1094_v32 = vpop.xlane.xlu0 %1093 }
 0x57a   : > { %4194 = vrcp.f32 %v1094_v32  ;;  %v1091_v33 = vpop.xlane.xlu1 %1090  ;;  %v5081_v32 = vadd.f32 %v5011_v27, %v4959_v4 }
 0x57b   : > { %4196 = vrcp.f32 %v1091_v33  ;;  %v5085_v33 = vadd.f32 %v4959_v4, %v5013_v28 }
 0x57e   : > { %v1295_v34 = vpop.xlane.xlu1 %1294 }
 0x57f   : > { %4198 = vrcp.f32 %v1295_v34  ;;  %v5089_v34 = vpack.i.bf16 %v5081_v32, %v5085_v33 }
 0x581   : > { %v1298_v35 = vpop.xlane.xlu0 %1297 }
 0x582   : > { %4200 = vrcp.f32 %v1298_v35  ;;  %v4121_v37 = vpop.permute.xlu1 %4120 }
 0x583   : > { %v4123_v42 = vunpack.i.h.bf16 %v4121_v37  ;;  %v4122_v8 = vunpack.i.l.bf16 %v4121_v37 }
 0x584   : > { %v4195_v36 = vpop.eup %4194 }
 0x585   : > { %v4197_v6 = vpop.eup %4196  ;;  %v1502_v38 = vpop.xlane.xlu0 %1501  ;;  %v1098_v40 = vmul.f32 %v4195_v36, %v4183_v10  ;;  %v3909_v50 = vpack.c.bf16 %v4123_v42, %v4122_v8  ;;  %v5107_v8 = vld [vmem:[#allocation5 + $0x1] ss:$0 sm:$0xff] }
 0x586   : > { %v1097_v39 = vmul.f32 %v4197_v6, %v4185_v14  ;;  %v4126_v47 = vpop.permute.xlu1 %4125  ;;  %4202 = vrcp.f32 %v1502_v38 }
 0x587   : > { %v4128_v51 = vunpack.i.h.bf16 %v4126_v47  ;;  %v4127_v52 = vunpack.i.l.bf16 %v4126_v47 }
 0x588   : > { %3724 = vmatprep.mubr.msk.f32.mxu1 %vm1076_vm4, %v1097_v39 }
 0x589   : > { %v4199_v41 = vpop.eup %4198  ;;  %v4116_v43 = vpop.permute.xlu0 %4115  ;;  %3725 = vmatmul.mubr.msk.f32.vlgmr.msra.gmra.mrb[6].mxu1 %vm1076_vm4, %v1098_v40  ;;  %v3913_v54 = vpack.c.bf16 %v4128_v51, %v4127_v52 }
 0x58a   : > { %v4118_v44 = vunpack.i.h.bf16 %v4116_v43  ;;  %v4117_v45 = vunpack.i.l.bf16 %v4116_v43  ;;  %v1301_v46 = vmul.f32 %v4199_v41, %v4187_v19 }
 0x58c   : > { %v3899_v48 = vpack.c.bf16 %v4118_v44, %v4117_v45  ;;  %3738 = vmatprep.mubr.msk.f32.mxu1 %vm1076_vm4, %v1301_v46  ;;  %v4201_v49 = vpop.eup %4200 }
 0x58d   : > { %v1302_v53 = vmul.f32 %v4201_v49, %v4189_v21  ;;  %v1597_v61 = vpop.permute.xlu0 %1596 }
 0x58e   : > { %3900 = vmatprep.subr.bf16.mxu1 %v3899_v48 }
 0x58f   : > { %3902 = vmatpush3.bf16.msra.mxu1 %v3899_v48 }
 0x590   : > { %3910 = vmatprep.subr.bf16.mxu1 %v3909_v50  ;;  %v4203_v56 = vpop.eup %4202 }
 0x591   : > { %v1506_v59 = vmul.f32 %v4203_v56, %v4191_v23 }
 0x592   : > { %3739 = vmatmul.mubr.msk.f32.vlgmr.msra.gmra.mrb[8].mxu1 %vm1076_vm4, %v1302_v53 }
 0x593   : > { %3912 = vmatpush3.bf16.msra.mxu1 %v3909_v50 }
 0x594   : > { %3915 = vmatprep.subr.msk.bf16.mxu1 %vm4989_vm3, %v3913_v54 }
 0x5b7   : > { %v1499_v55 = vpop.xlane.xlu1 %1498 }
 0x5b8   : > { %4204 = vrcp.f32 %v1499_v55 }
 0x5bb   : > { %v1595_v60 = vpop.permute.xlu1 %1594 }
 0x5c2   : > { %v4205_v57 = vpop.eup %4204 }
 0x5c3   : > { %v1505_v58 = vmul.f32 %v4205_v57, %v4193_v29 }
 0x5c5   : > { %3752 = vmatprep.mubr.msk.f32.mxu1 %vm1076_vm4, %v1505_v58 }
 0x5c6   : > { %3753 = vmatmul.mubr.msk.f32.vlgmr.msra.gmra.mrb[10].mxu1 %vm1076_vm4, %v1506_v59 }
 0x5c7   : > { %3918 = vmatpush3.bf16.xpose.msk.msra.mxu1 %vm4989_vm3, %v3913_v54  ;;  %3759 = vmatprep.mubr.msk.f32.mxu1 %vm984_vm2, %v1595_v60 }
 0x5ce   : > { %3760 = vmatmul.mubr.msk.f32.vlgmr.msra.gmra.mrb[12].mxu1 %vm984_vm2, %v1597_v61 }
 0x65c   : > { %v5059_v62 = vpop.f32.mrb[6].mxu1 }
 0x65d   : > { %v5061_v63 = vpop.f32.mrb[7].mxu1 }
 0x665   : > { %v5063_v0 = vpop.f32.mrb[8].mxu1 }
 0x666   : > { %v5065_v1 = vpop.f32.mrb[9].mxu1 }
 0x699   : > { %v5067_v2 = vpop.f32.mrb[10].mxu1 }
 0x69a   : > { %v5069_v3 = vpop.f32.mrb[11].mxu1 }
 0x6a1   : > { %v3761_v5 = vpop.f32.mrb[12].mxu1 }
 0x6a2   : > { %v1686_v7 = vmul.f32 0.35355338, %v3761_v5  ;;  %v1676_v10 = vpop.f32.mrb[13].mxu1 }
 0x6a3   : > { %v1685_v11 = vmul.f32 0.35355338, %v1676_v10 }
 0x6a4   : > { %v1688_v12 = vadd.f32 %v5015_v30, %v1686_v7 }
 0x6a5   : > { %v1687_v13 = vadd.f32 %v5015_v30, %v1685_v11 }
 0x6a6   : > { %v1692_v14 = vsel %vm1076_vm4, %v1688_v12, -inf }
 0x6a7   : > { %1693 = vmax.xlane.f32.xlu0 %v1692_v14  ;;  %v1689_v15 = vsel %vm1076_vm4, %v1687_v13, -inf }
 0x6a8   : > { %1690 = vmax.xlane.f32.xlu1 %v1689_v15 }
 0x6b9   : > { %4130 = vrot.lane.b32.xlu1 %v4971_v9, %s4550_s20 }
 0x734   : > { %v1694_v17 = vpop.xlane.xlu0 %1693 }
 0x735   : > { %v1696_v18 = vsub.f32 %v1688_v12, %v1694_v17  ;;  %v1691_v19 = vpop.xlane.xlu1 %1690 }
 0x736   : > { %v1695_v20 = vsub.f32 %v1687_v13, %v1691_v19 }
 0x737   : > { %v1699_v21 = vmul.f32 1.442695, %v1696_v18 }
 0x738   : > { %v1697_v22 = vmul.f32 1.442695, %v1695_v20 }
 0x739   : > { %4206 = vpow2.f32 %v1699_v21  ;;  %v4131_v23 = vpop.permute.xlu1 %4130 }
 0x73a   : > { %v4133_v24 = vunpack.i.h.bf16 %v4131_v23  ;;  %v4132_v30 = vunpack.i.l.bf16 %v4131_v23  ;;  %4208 = vpow2.f32 %v1697_v22 }
 0x73c   : > { %v3919_v25 = vpack.c.bf16 %v4133_v24, %v4132_v30 }
 0x73e   : > { %3920 = vmatprep.subr.bf16.mxu0 %v3919_v25 }
 0x73f   : > { %3922 = vmatpush3.bf16.msra.mxu0 %v3919_v25 }
 0x743   : > { %v4207_v26 = vpop.eup %4206 }
 0x744   : > { %v1704_v29 = vsel %vm1076_vm4, %v4207_v26, 0.0  ;;  %v4209_v31 = vpop.eup %4208 }
 0x745   : > { %1705 = vadd.xlane.f32.xlu0 %v1704_v29  ;;  %v1701_v9 = vsel %vm1076_vm4, %v4209_v31, 0.0 }
 0x749   : > { %1702 = vadd.xlane.f32.xlu0 %v1701_v9 }
 0x75f   : > { %4135 = vrot.lane.b32.xlu0 %v5089_v34, %s4541_s16 }
 0x7d2   : > { %v1706_v35 = vpop.xlane.xlu0 %1705 }
 0x7d3   : > { %4210 = vrcp.f32 %v1706_v35 }
 0x7d6   : > { %v1703_v36 = vpop.xlane.xlu0 %1702 }
 0x7d7   : > { %4212 = vrcp.f32 %v1703_v36 }
 0x7da   : > { %v4136_v6 = vpop.permute.xlu0 %4135 }
 0x7db   : > { %v4138_v37 = vunpack.i.h.bf16 %v4136_v6  ;;  %v4137_v38 = vunpack.i.l.bf16 %v4136_v6 }
 0x7dd   : > { %v3923_v27 = vpack.c.bf16 %v4138_v37, %v4137_v38  ;;  %v4211_v4 = vpop.eup %4210 }
 0x7de   : > { %v1710_v40 = vmul.f32 %v4211_v4, %v4207_v26 }
 0x7df   : > { %3925 = vmatprep.subr.msk.bf16.mxu0 %vm4989_vm3, %v3923_v27 }
 0x7e1   : > { %v4213_v28 = vpop.eup %4212 }
 0x7e2   : > { %v1709_v39 = vmul.f32 %v4213_v28, %v4209_v31 }
 0x7e4   : > { %3766 = vmatprep.mubr.msk.f32.mxu0 %vm1076_vm4, %v1709_v39 }
 0x7e5   : > { %3767 = vmatmul.mubr.msk.f32.vlgmr.msra.gmra.mrb[4].mxu0 %vm1076_vm4, %v1710_v40 }
 0x7e6   : > { %3928 = vmatpush3.bf16.xpose.msk.msra.mxu0 %vm4989_vm3, %v3923_v27  ;;  %3773 = vmatprep.mubr.msk.f32.mxu0 %vm984_vm2, %v5085_v33 }
 0x7ed   : > { %3774 = vmatmul.mubr.msk.f32.vlgmr.msra.gmra.mrb[6].mxu0 %vm984_vm2, %v5081_v32 }
 0x8b8   : > { %v5103_v41 = vpop.f32.mrb[4].mxu0 }
 0x8b9   : > { %v5105_v42 = vpop.f32.mrb[5].mxu0 }
 0x8c0   : > { %v3775_v43 = vpop.f32.mrb[6].mxu0 }
 0x8c1   : > { %v1920_v44 = vmul.f32 0.35355338, %v3775_v43  ;;  %v1910_v45 = vpop.f32.mrb[7].mxu0 }
 0x8c2   : > { %v1919_v46 = vmul.f32 0.35355338, %v1910_v45 }
 0x8c3   : > { %v1926_v47 = vadd.f32 %v5107_v8, %v1920_v44 }
 0x8c4   : > { %v1925_v48 = vadd.f32 %v5107_v8, %v1919_v46 }
 0x8c5   : > { %v1930_v49 = vsel %vm1076_vm4, %v1926_v47, -inf }
 0x8c6   : > { %1931 = vmax.xlane.f32.xlu0 %v1930_v49  ;;  %v1927_v50 = vsel %vm1076_vm4, %v1925_v48, -inf }
 0x8c7   : > { %1928 = vmax.xlane.f32.xlu1 %v1927_v50 }
 0x8d8   : > { %4140 = vrot.lane.b32.xlu1 %v5089_v34, %s4545_s2 }
 0x8dc   : > { %2036 = vrot.lane.b32.xlu1 %v5085_v33, %s4542_s12 }
 0x953   : > { %v1932_v51 = vpop.xlane.xlu0 %1931 }
 0x954   : > { %v1934_v52 = vsub.f32 %v1926_v47, %v1932_v51  ;;  %v1929_v53 = vpop.xlane.xlu1 %1928 }
 0x955   : > { %v1933_v54 = vsub.f32 %v1925_v48, %v1929_v53 }
 0x956   : > { %v1937_v55 = vmul.f32 1.442695, %v1934_v52 }
 0x957   : > { %v1935_v56 = vmul.f32 1.442695, %v1933_v54 }
 0x958   : > { %4214 = vpow2.f32 %v1937_v55  ;;  %v4141_v57 = vpop.permute.xlu1 %4140 }
 0x959   : > { %4216 = vpow2.f32 %v1935_v56  ;;  %v4143_v58 = vunpack.i.h.bf16 %v4141_v57  ;;  %v4142_v59 = vunpack.i.l.bf16 %v4141_v57 }
 0x95b   : > { %v3929_v60 = vpack.c.bf16 %v4143_v58, %v4142_v59 }
 0x95c   : > { %v2037_v11 = vpop.permute.xlu1 %2036 }
 0x95d   : > { %3930 = vmatprep.subr.bf16.mxu1 %v3929_v60 }
 0x95e   : > { %3932 = vmatpush3.bf16.msra.mxu1 %v3929_v60 }
 0x962   : > { %v4215_v61 = vpop.eup %4214 }
 0x963   : > { %v4217_v5 = vpop.eup %4216  ;;  %v1942_v7 = vsel %vm1076_vm4, %v4215_v61, 0.0 }
 0x964   : > { %1943 = vadd.xlane.f32.xlu0 %v1942_v7  ;;  %v1939_v10 = vsel %vm1076_vm4, %v4217_v5, 0.0 }
 0x965   : > { %1940 = vadd.xlane.f32.xlu1 %v1939_v10 }
 0x976   : > { %2038 = vrot.lane.b32.xlu1 %v5081_v32, %s4542_s12 }
 0x97a   : > { %4145 = vrot.lane.b32.xlu0 %v5089_v34, %s4540_s26  ;;  %s5451_s26 = scalar_lea.vmem %s5377_s7, %s4889_s0 }
 0x9f1   : > { %v1944_v12 = vpop.xlane.xlu0 %1943 }
 0x9f2   : > { %4218 = vrcp.f32 %v1944_v12  ;;  %v1941_v13 = vpop.xlane.xlu1 %1940 }
 0x9f3   : > { %4220 = vrcp.f32 %v1941_v13 }
 0x9f5   : > { %v4146_v14 = vpop.permute.xlu0 %4145 }
 0x9f6   : > { %v4148_v15 = vunpack.i.h.bf16 %v4146_v14  ;;  %v4147_v17 = vunpack.i.l.bf16 %v4146_v14  ;;  %v2039_v23 = vpop.permute.xlu1 %2038 }
 0x9f8   : > { %v3933_v18 = vpack.c.bf16 %v4148_v15, %v4147_v17 }
 0x9fa   : > { %3935 = vmatprep.subr.msk.bf16.mxu1 %vm4989_vm3, %v3933_v18 }
 0x9fc   : > { %v4219_v19 = vpop.eup %4218 }
 0x9fd   : > { %v4221_v20 = vpop.eup %4220  ;;  %v1948_v22 = vmul.f32 %v4219_v19, %v4215_v61 }
 0x9fe   : > { %v1947_v21 = vmul.f32 %v4221_v20, %v4217_v5 }
 0xa00   : > { %3780 = vmatprep.mubr.msk.f32.mxu1 %vm1076_vm4, %v1947_v21 }
 0xa01   : > { %3781 = vmatmul.mubr.msk.f32.vlgmr.msra.gmra.mrb[14].mxu1 %vm1076_vm4, %v1948_v22 }
 0xa02   : > { %3938 = vmatpush3.bf16.xpose.msk.msra.mxu1 %vm4989_vm3, %v3933_v18  ;;  %3787 = vmatprep.mubr.msk.f32.mxu1 %vm984_vm2, %v2037_v11 }
 0xa09   : > { %3788 = vmatmul.mubr.msk.f32.vlgmr.msra.gmra.mrb[16].mxu1 %vm984_vm2, %v2039_v23 }
 0xad4   : > { %v5131_v24 = vpop.f32.mrb[14].mxu1 }
 0xad5   : > { %v5133_v30 = vpop.f32.mrb[15].mxu1 }
 0xadc   : > { %v3789_v25 = vpop.f32.mrb[16].mxu1 }
 0xadd   : > { %v2128_v26 = vmul.f32 0.35355338, %v3789_v25  ;;  %v2118_v29 = vpop.f32.mrb[17].mxu1 }
 0xade   : > { %v2127_v31 = vmul.f32 0.35355338, %v2118_v29 }
 0xadf   : > { %v2130_v9 = vadd.f32 %v5107_v8, %v2128_v26 }
 0xae0   : > { %v2129_v35 = vadd.f32 %v5107_v8, %v2127_v31 }
 0xae1   : > { %v2134_v36 = vsel %vm1076_vm4, %v2130_v9, -inf }
 0xae2   : > { %2135 = vmax.xlane.f32.xlu0 %v2134_v36  ;;  %v2131_v6 = vsel %vm1076_vm4, %v2129_v35, -inf }
 0xae3   : > { %2132 = vmax.xlane.f32.xlu1 %v2131_v6 }
 0xaf4   : > { %4150 = vrot.lane.b32.xlu1 %v5089_v34, %s4548_s13 }
 0xaf8   : > { %2240 = vrot.lane.b32.xlu1 %v5085_v33, %s4544_s27 }
 0xafc   : > { %2242 = vrot.lane.b32.xlu1 %v5081_v32, %s4544_s27 }
 0xb6f   : > { %v2136_v37 = vpop.xlane.xlu0 %2135 }
 0xb70   : > { %v2138_v38 = vsub.f32 %v2130_v9, %v2136_v37  ;;  %v2133_v27 = vpop.xlane.xlu1 %2132 }
 0xb71   : > { %v2137_v4 = vsub.f32 %v2129_v35, %v2133_v27 }
 0xb72   : > { %v2141_v28 = vmul.f32 1.442695, %v2138_v38 }
 0xb73   : > { %v2139_v39 = vmul.f32 1.442695, %v2137_v4 }
 0xb74   : > { %4222 = vpow2.f32 %v2141_v28  ;;  %v4151_v40 = vpop.permute.xlu1 %4150 }
 0xb75   : > { %v4153_v43 = vunpack.i.h.bf16 %v4151_v40  ;;  %v4152_v44 = vunpack.i.l.bf16 %v4151_v40  ;;  %4224 = vpow2.f32 %v2139_v39 }
 0xb77   : > { %v3939_v45 = vpack.c.bf16 %v4153_v43, %v4152_v44 }
 0xb78   : > { %v2241_v60 = vpop.permute.xlu1 %2240 }
 0xb79   : > { %3940 = vmatprep.subr.bf16.mxu0 %v3939_v45 }
 0xb7a   : > { %3942 = vmatpush3.bf16.msra.mxu0 %v3939_v45 }
 0xb7c   : > { %v2243_v61 = vpop.permute.xlu1 %2242 }
 0xb7e   : > { %v4223_v46 = vpop.eup %4222 }
 0xb7f   : > { %v2146_v47 = vsel %vm1076_vm4, %v4223_v46, 0.0  ;;  %v4225_v48 = vpop.eup %4224 }
 0xb80   : > { %2147 = vadd.xlane.f32.xlu0 %v2146_v47  ;;  %v2143_v49 = vsel %vm1076_vm4, %v4225_v48, 0.0 }
 0xb84   : > { %2144 = vadd.xlane.f32.xlu0 %v2143_v49 }
 0xb9a   : > { %4155 = vrot.lane.b32.xlu0 %v5089_v34, %s4543_s21  ;;  %s5454_s21 = sld [smem:[#allocation29_spill]] (!%p3588_p5) }
 0xc0d   : > { %v2148_v50 = vpop.xlane.xlu0 %2147 }
 0xc0e   : > { %4226 = vrcp.f32 %v2148_v50 }
 0xc11   : > { %v2145_v51 = vpop.xlane.xlu0 %2144 }
 0xc12   : > { %4228 = vrcp.f32 %v2145_v51 }
 0xc15   : > { %v4156_v52 = vpop.permute.xlu0 %4155 }
 0xc16   : > { %v4158_v53 = vunpack.i.h.bf16 %v4156_v52  ;;  %v4157_v54 = vunpack.i.l.bf16 %v4156_v52 }
 0xc18   : > { %v3943_v55 = vpack.c.bf16 %v4158_v53, %v4157_v54  ;;  %v4227_v56 = vpop.eup %4226 }
 0xc19   : > { %v2152_v59 = vmul.f32 %v4227_v56, %v4223_v46 }
 0xc1a   : > { %3945 = vmatprep.subr.msk.bf16.mxu0 %vm4989_vm3, %v3943_v55 }
 0xc1c   : > { %v4229_v57 = vpop.eup %4228 }
 0xc1d   : > { %v2151_v58 = vmul.f32 %v4229_v57, %v4225_v48 }
 0xc1f   : > { %3794 = vmatprep.mubr.msk.f32.mxu0 %vm1076_vm4, %v2151_v58 }
 0xc20   : > { %3795 = vmatmul.mubr.msk.f32.vlgmr.msra.gmra.mrb[8].mxu0 %vm1076_vm4, %v2152_v59 }
 0xc21   : > { %3948 = vmatpush3.bf16.xpose.msk.msra.mxu0 %vm4989_vm3, %v3943_v55  ;;  %3801 = vmatprep.mubr.msk.f32.mxu0 %vm984_vm2, %v2241_v60 }
 0xc28   : > { %3802 = vmatmul.mubr.msk.f32.vlgmr.msra.gmra.mrb[10].mxu0 %vm984_vm2, %v2243_v61 }
 0xcf3   : > { %v5157_v5 = vpop.f32.mrb[8].mxu0 }
 0xcf4   : > { %v5159_v7 = vpop.f32.mrb[9].mxu0 }
 0xcfb   : > { %v3803_v10 = vpop.f32.mrb[10].mxu0 }
 0xcfc   : > { %v2332_v11 = vmul.f32 0.35355338, %v3803_v10  ;;  %v2322_v12 = vpop.f32.mrb[11].mxu0 }
 0xcfd   : > { %v2331_v13 = vmul.f32 0.35355338, %v2322_v12  ;;  %v2679_v12 = vld [vmem:[%s4904_s18 + $0x8] sm:$0xff] }
 0xcfe   : > { %v2334_v14 = vadd.f32 %v5107_v8, %v2332_v11  ;;  %v2678_v11 = vld [vmem:[%s4904_s18] sm:$0xff] }
 0xcff   : > { %v2333_v15 = vadd.f32 %v5107_v8, %v2331_v13  ;;  %v3963_v13 = vpack.c.bf16 %v2679_v12, %v2678_v11 }
 0xd00   : > { %v2338_v17 = vsel %vm1076_vm4, %v2334_v14, -inf }
 0xd01   : > { %2339 = vmax.xlane.f32.xlu0 %v2338_v17  ;;  %v2335_v18 = vsel %vm1076_vm4, %v2333_v15, -inf }
 0xd02   : > { %2336 = vmax.xlane.f32.xlu1 %v2335_v18 }
 0xd13   : > { %4160 = vrot.lane.b32.xlu1 %v5089_v34, %s4546_s29 }
 0xd17   : > { %2444 = vrot.lane.b32.xlu1 %v5085_v33, %s4549_s24 }
 0xd1b   : > { %2446 = vrot.lane.b32.xlu1 %v5081_v32, %s4549_s24 }
 0xd8e   : > { %v2340_v19 = vpop.xlane.xlu0 %2339 }
 0xd8f   : > { %v2342_v20 = vsub.f32 %v2334_v14, %v2340_v19  ;;  %v2337_v21 = vpop.xlane.xlu1 %2336 }
 0xd90   : > { %v2341_v22 = vsub.f32 %v2333_v15, %v2337_v21  ;;  %v2680_v21 = vld [vmem:[%s4904_s18 + $0x10] sm:$0xff] }
 0xd91   : > { %v2345_v23 = vmul.f32 1.442695, %v2342_v20 }
 0xd92   : > { %v2343_v25 = vmul.f32 1.442695, %v2341_v22  ;;  %v2681_v22 = vld [vmem:[%s4904_s18 + $0x18] sm:$0xff] }
 0xd93   : > { %4230 = vpow2.f32 %v2345_v23  ;;  %v4161_v26 = vpop.permute.xlu1 %4160 }
 0xd94   : > { %v4163_v29 = vunpack.i.h.bf16 %v4161_v26  ;;  %v4162_v31 = vunpack.i.l.bf16 %v4161_v26  ;;  %4232 = vpow2.f32 %v2343_v25 }
 0xd96   : > { %v3949_v9 = vpack.c.bf16 %v4163_v29, %v4162_v31  ;;  %v3967_v29 = vpack.c.bf16 %v2681_v22, %v2680_v21 }
 0xd97   : > { %v2445_v45 = vpop.permute.xlu1 %2444 }
 0xd98   : > { %3950 = vmatprep.subr.bf16.mxu1 %v3949_v9 }
 0xd99   : > { %3952 = vmatpush3.bf16.msra.mxu1 %v3949_v9 }
 0xd9b   : > { %v2447_v46 = vpop.permute.xlu1 %2446 }
 0xd9d   : > { %v4231_v35 = vpop.eup %4230 }
 0xd9e   : > { %v2350_v33 = vsel %vm1076_vm4, %v4231_v35, 0.0  ;;  %v4233_v36 = vpop.eup %4232 }
 0xd9f   : > { %2351 = vadd.xlane.f32.xlu0 %v2350_v33  ;;  %v2347_v32 = vsel %vm1076_vm4, %v4233_v36, 0.0 }
 0xda3   : > { %2348 = vadd.xlane.f32.xlu0 %v2347_v32 }
 0xdb9   : > { %4165 = vrot.lane.b32.xlu0 %v5089_v34, %s4547_s15 }
 0xe2c   : > { %v2352_v6 = vpop.xlane.xlu0 %2351 }
 0xe2d   : > { %4234 = vrcp.f32 %v2352_v6 }
 0xe30   : > { %v2349_v37 = vpop.xlane.xlu0 %2348 }
 0xe31   : > { %4236 = vrcp.f32 %v2349_v37 }
 0xe34   : > { %v4166_v38 = vpop.permute.xlu0 %4165 }
 0xe35   : > { %v4168_v27 = vunpack.i.h.bf16 %v4166_v38  ;;  %v4167_v4 = vunpack.i.l.bf16 %v4166_v38 }
 0xe37   : > { %v3953_v28 = vpack.c.bf16 %v4168_v27, %v4167_v4  ;;  %v4235_v39 = vpop.eup %4234 }
 0xe38   : > { %v2356_v44 = vmul.f32 %v4235_v39, %v4231_v35 }
 0xe39   : > { %3955 = vmatprep.subr.msk.bf16.mxu1 %vm4989_vm3, %v3953_v28 }
 0xe3b   : > { %v4237_v40 = vpop.eup %4236 }
 0xe3c   : > { %v2355_v43 = vmul.f32 %v4237_v40, %v4233_v36  ;;  %v4271_v40 = vld [vmem:[#allocation11 + $0x8] sm:$0xff] }
 0xe3e   : > { %3808 = vmatprep.mubr.msk.f32.mxu1 %vm1076_vm4, %v2355_v43 }
 0xe3f   : > { %3809 = vmatmul.mubr.msk.f32.vlgmr.msra.gmra.mrb[18].mxu1 %vm1076_vm4, %v2356_v44 }
 0xe40   : > { %3958 = vmatpush3.bf16.xpose.msk.msra.mxu1 %vm4989_vm3, %v3953_v28  ;;  %3815 = vmatprep.mubr.msk.f32.mxu1 %vm984_vm2, %v2445_v45  ;;  %v4270_v28 = vld [vmem:[#allocation11] sm:$0xff] }
 0xe47   : > { %3816 = vmatmul.mubr.msk.f32.vlgmr.msra.gmra.mrb[20].mxu1 %vm984_vm2, %v2447_v46 }
 0xf12   : > { %v3810_v47 = vpop.f32.mrb[18].mxu1 }
 0xf13   : > { %v2435_v48 = vpop.f32.mrb[19].mxu1 }
 0xf1a   : > { %v3817_v49 = vpop.f32.mrb[20].mxu1 }
 0xf1b   : > { %v2536_v50 = vmul.f32 0.35355338, %v3817_v49  ;;  %v2526_v51 = vpop.f32.mrb[21].mxu1 }
 0xf1c   : > { %v2535_v52 = vmul.f32 0.35355338, %v2526_v51 }
 0xf1d   : > { %v2538_v53 = vadd.f32 %v5107_v8, %v2536_v50 }
 0xf1e   : > { %v2537_v54 = vadd.f32 %v5107_v8, %v2535_v52 }
 0xf1f   : > { %v2542_v55 = vsel %vm1076_vm4, %v2538_v53, -inf }
 0xf20   : > { %2543 = vmax.xlane.f32.xlu0 %v2542_v55  ;;  %v2539_v16 = vsel %vm1076_vm4, %v2537_v54, -inf }
 0xf21   : > { %2540 = vmax.xlane.f32.xlu1 %v2539_v16 }
 0xf32   : > { %4170 = vrot.lane.b32.xlu1 %v5089_v34, %s4550_s20 }
 0xf36   : > { %1802 = vrot.lane.b32.xlu1 %v5063_v0, %s4551_s1 }
 0xf3a   : > { %1808 = vrot.lane.b32.xlu1 %v5069_v3, %s4552_s4 }
 0xf3e   : > { %1810 = vrot.lane.b32.xlu1 %v5067_v2, %s4552_s4 }
 0xf42   : > { %1818 = vrot.lane.b32.xlu1 %v5103_v41, %s4553_s5 }
 0xf46   : > { %2652 = vrot.lane.b32.xlu1 %v5157_v5, %s4551_s1 }
 0xf4a   : > { %2660 = vrot.lane.b32.xlu1 %v3810_v47, %s4552_s4 }
 0xfad   : > { %v2544_v34 = vpop.xlane.xlu0 %2543 }
 0xfae   : > { %v2546_v8 = vsub.f32 %v2538_v53, %v2544_v34  ;;  %v2541_v56 = vpop.xlane.xlu1 %2540 }
 0xfaf   : > { %v2545_v0 = vsub.f32 %v2537_v54, %v2541_v56 }
 0xfb0   : > { %v2549_v57 = vmul.f32 1.442695, %v2546_v8 }
 0xfb1   : > { %v2547_v58 = vmul.f32 1.442695, %v2545_v0 }
 0xfb2   : > { %v4171_v3 = vpop.permute.xlu1 %4170 }
 0xfb3   : > { %4238 = vpow2.f32 %v2547_v58  ;;  %v4173_v2 = vunpack.i.h.bf16 %v4171_v3  ;;  %v4172_v59 = vunpack.i.l.bf16 %v4171_v3 }
 0xfb4   : > { %4240 = vpow2.f32 %v2549_v57 }
 0xfb5   : > { %v3959_v60 = vpack.c.bf16 %v4173_v2, %v4172_v59 }
 0xfb6   : > { %v1803_v15 = vpop.permute.xlu1 %1802 }
 0xfb7   : > { %3960 = vmatprep.subr.bf16.mxu0 %v3959_v60  ;;  %v1823_v35 = vsel %vm984_vm2, %v5059_v62, %v1803_v15  ;;  %v3571_v62 = vld [vmem:[%s5451_s26] ss:$0 sm:$0xff] }
 0xfb8   : > { %3962 = vmatpush3.bf16.msra.mxu0 %v3959_v60 }
 0xfb9   : > { %3964 = vmatprep.subr.bf16.mxu0 %v3963_v13 }
 0xfba   : > { %v1809_v18 = vpop.permute.xlu1 %1808 }
 0xfbd   : > { %v4239_v41 = vpop.eup %4238 }
 0xfbe   : > { %v2551_v61 = vsel %vm1076_vm4, %v4239_v41, 0.0  ;;  %v4241_v5 = vpop.eup %4240  ;;  %v1811_v25 = vpop.permute.xlu1 %1810 }
 0xfbf   : > { %2552 = vadd.xlane.f32.xlu0 %v2551_v61  ;;  %v2554_v10 = vsel %vm1076_vm4, %v4241_v5, 0.0  ;;  %v1825_v33 = vsel %vm1076_vm4, %v1823_v35, %v1811_v25 }
 0xfc3   : > { %2555 = vadd.xlane.f32.xlu0 %v2554_v10  ;;  %v4273_v10 = vld [vmem:[#allocation11 + $0x18] sm:$0xff] }
 0xfd9   : > { %1800 = vrot.lane.b32.xlu0 %v5065_v1, %s4551_s1 }
 0xfdd   : > { %1816 = vrot.lane.b32.xlu0 %v5105_v42, %s4553_s5 }
 0xfe1   : > { %2650 = vrot.lane.b32.xlu0 %v5159_v7, %s4551_s1 }
 0xfe5   : > { %2658 = vrot.lane.b32.xlu0 %v2435_v48, %s4552_s4 }
0x104c   : > { %v2553_v14 = vpop.xlane.xlu0 %2552 }
0x104d   : > { %4242 = vrcp.f32 %v2553_v14 }
0x1050   : > { %v2556_v17 = vpop.xlane.xlu0 %2555 }
0x1051   : > { %4244 = vrcp.f32 %v2556_v17  ;;  %v2864_v17 = vld [vmem:[%s4917_s10] sm:$0xff] }
0x1054   : > { %v1801_v1 = vpop.permute.xlu0 %1800 }
0x1055   : > { %v1822_v42 = vsel %vm984_vm2, %v5061_v63, %v1801_v1  ;;  %v1819_v63 = vpop.permute.xlu1 %1818  ;;  %v2865_v1 = vld [vmem:[%s4917_s10 + $0x8] sm:$0xff] }
0x1056   : > { %v1824_v31 = vsel %vm1076_vm4, %v1822_v42, %v1809_v18  ;;  %v1828_v36 = vsel %vm1826_vm5, %v1825_v33, %v1819_v63  ;;  %v2866_v18 = vld [vmem:[%s4917_s10 + $0x10] sm:$0xff] }
0x1057   : > { %v4243_v19 = vpop.eup %4242 }
0x1058   : > { %v2559_v20 = vmul.f32 %v4243_v19, %v4239_v41  ;;  %v1817_v7 = vpop.permute.xlu0 %1816  ;;  %v4272_v41 = vld [vmem:[#allocation11 + $0x10] sm:$0xff]  ;;  %v3971_v19 = vpack.c.bf16 %v2865_v1, %v2864_v17 }
0x1059   : > { %v1827_v9 = vsel %vm1826_vm5, %v1824_v31, %v1817_v7  ;;  %v2653_v46 = vpop.permute.xlu1 %2652 }
0x105a   : > { %3822 = vmatprep.mubr.msk.f32.mxu0 %vm1076_vm4, %v2559_v20  ;;  %v2673_v52 = vsel %vm984_vm2, %v5131_v24, %v2653_v46  ;;  %v2867_v20 = vld [vmem:[%s4917_s10 + $0x18] sm:$0xff]  ;;  %3972 = vmatprep.subr.bf16.mxu1 %v3971_v19 }
0x105b   : > { %v4245_v23 = vpop.eup %4244  ;;  %v3975_v21 = vpack.c.bf16 %v2867_v20, %v2866_v18  ;;  %3974 = vmatpush3.bf16.msra.mxu1 %v3971_v19 }
0x105c   : > { %v2560_v26 = vmul.f32 %v4245_v23, %v4241_v5  ;;  %v2651_v47 = vpop.permute.xlu0 %2650 }
0x105d   : > { %v2661_v48 = vpop.permute.xlu1 %2660  ;;  %v2672_v50 = vsel %vm984_vm2, %v5133_v30, %v2651_v47  ;;  %3976 = vmatprep.subr.bf16.mxu1 %v3975_v21 }
0x105e   : > { %3823 = vmatmul.mubr.msk.f32.vlgmr.msra.gmra.mrb[12].mxu0 %vm1076_vm4, %v2560_v26  ;;  %v2675_v55 = vsel %vm1076_vm4, %v2673_v52, %v2661_v48 }
0x105f   : > { %3966 = vmatpush3.bf16.msra.mxu0 %v3963_v13  ;;  %3833 = vmatprep.mubr.msk.f32.mxu0 %vm795_vm1, %v1827_v9 }
0x1060   : > { %3968 = vmatprep.subr.bf16.mxu0 %v3967_v29  ;;  %v2659_v49 = vpop.permute.xlu0 %2658  ;;  %3978 = vmatpush3.bf16.msra.mxu1 %v3975_v21 }
0x1061   : > { %v2674_v53 = vsel %vm1076_vm4, %v2672_v50, %v2659_v49  ;;  %v3080_v49 = vld [vmem:[%s4923_s30] sm:$0xff]  ;;  %v3081_v50 = vld [vmem:[%s4923_s30 + $0x8] sm:$0xff] }
0x1062   : > { %v3979_v52 = vpack.c.bf16 %v3081_v50, %v3080_v49 }
0x1063   : > { %3970 = vmatpush3.bf16.msra.mxu0 %v3967_v29 }
0x1064   : > { %3980 = vmatprep.subr.bf16.mxu0 %v3979_v52 }
0x1066   : > { %3834 = vmatmul.mubr.msk.f32.vlgmr.msra.gmra.mrb[14].mxu0 %vm795_vm1, %v1828_v36 }
0x1067   : > { %3982 = vmatpush3.bf16.msra.mxu0 %v3979_v52 }
0x1131   : > { %v3824_v32 = vpop.f32.mrb[12].mxu0 }
0x1132   : > { %2668 = vrot.lane.b32.xlu1 %v3824_v32, %s4553_s5  ;;  %v2639_v6 = vpop.f32.mrb[13].mxu0 }
0x1133   : > { %2666 = vrot.lane.b32.xlu0 %v2639_v6, %s4553_s5 }
0x1139   : > { %v3835_v37 = vpop.f32.mrb[14].mxu0 }
0x113a   : > { %v2767_v38 = vpop.f32.mrb[15].mxu0  ;;  %v2773_v4 = vadd.f32 %v3835_v37, %v3571_v62 }
0x113b   : > { %v2768_v27 = vadd.f32 %v3571_v62, %v2767_v38 }
0x113c   : > { %v5234_v43 = vadd.f32 %v4271_v40, %v2773_v4 }
0x113d   : > { %v5232_v39 = vadd.f32 %v4270_v28, %v2768_v27  ;;  %v3576_v27 = vld [vmem:[%s649_s23] ss:$0 sm:$0xff] }
0x113e   : > { %v2795_v45 = vsel %vm795_vm1, %v5234_v43, 0.0 }
0x113f   : > { %v2792_v44 = vsel %vm795_vm1, %v5232_v39, 0.0 }
0x1152   : > { %2793 = vadd.xlane.f32.xlu0 %v2792_v44  ;;  %v3577_v44 = vld [vmem:[%s762_s14] ss:$0 sm:$0xff] }
0x1156   : > { %2796 = vadd.xlane.f32.xlu1 %v2795_v45 }
0x11a4   : > { %v2669_v51 = vpop.permute.xlu1 %2668 }
0x11a5   : > { %v2667_v54 = vpop.permute.xlu0 %2666  ;;  %v2677_v34 = vsel %vm1826_vm5, %v2675_v55, %v2669_v51  ;;  %v3082_v55 = vld [vmem:[%s4923_s30 + $0x10] sm:$0xff] }
0x11a6   : > { %v2676_v16 = vsel %vm1826_vm5, %v2674_v53, %v2667_v54 }
0x11a7   : > { %3836 = vmatprep.mubr.msk.f32.mxu0 %vm795_vm1, %v2676_v16  ;;  %v3083_v16 = vld [vmem:[%s4923_s30 + $0x18] sm:$0xff] }
0x11a8   : > { %3837 = vmatmul.mubr.msk.f32.gmra.mrb[16].mxu0 %vm795_vm1, %v2677_v34 }
0x11df   : > { %v2794_v57 = vpop.xlane.xlu0 %2793 }
0x11e0   : > { %v2804_v2 = vmul.f32 0.03125, %v2794_v57  ;;  %v3086_v57 = vld [vmem:[%s4923_s30 + $0x30] sm:$0xff] }
0x11e2   : > { %v2808_v5 = vsub.f32 %v5232_v39, %v2804_v2 }
0x11e3   : > { %v2797_v8 = vpop.xlane.xlu1 %2796 }
0x11e4   : > { %v2805_v56 = vmul.f32 0.03125, %v2797_v8  ;;  %v2812_v14 = vmul.f32 %v2808_v5, %v2808_v5  ;;  %v3983_v8 = vpack.c.bf16 %v3083_v16, %v3082_v55 }
0x11e6   : > { %v2809_v30 = vsub.f32 %v5234_v43, %v2805_v56  ;;  %v2816_v15 = vsel %vm795_vm1, %v2812_v14, 0.0  ;;  %3984 = vmatprep.subr.bf16.mxu0 %v3983_v8  ;;  %v5291_v14 = vld [vmem:[%s657_s6] ss:$0 sm:$0xff] }
0x11e7   : > { %3986 = vmatpush3.bf16.msra.mxu0 %v3983_v8 }
0x11e8   : > { %v2813_v0 = vmul.f32 %v2809_v30, %v2809_v30 }
0x11ea   : > { %v2819_v24 = vsel %vm795_vm1, %v2813_v0, 0.0  ;;  %v3085_v0 = vld [vmem:[%s4923_s30 + $0x28] sm:$0xff] }
0x11eb   : > { %2820 = vadd.xlane.f32.xlu1 %v2819_v24 }
0x1278   : > { %v2821_v22 = vpop.xlane.xlu1 %2820 }
0x1279   : > { %v2829_v42 = vmul.f32 0.03125, %v2821_v22 }
0x127b   : > { %v3838_v58 = vpop.f32.mrb[16].mxu0  ;;  %v2833_v26 = vadd.f32 1e-05, %v2829_v42 }
0x127c   : > { %v2777_v3 = vpop.f32.mrb[17].mxu0  ;;  %v2783_v59 = vadd.f32 %v3838_v58, %v3571_v62  ;;  %v3087_v58 = vld [vmem:[%s4923_s30 + $0x38] sm:$0xff] }
0x127d   : > { %v2778_v60 = vadd.f32 %v3571_v62, %v2777_v3  ;;  %4246 = vrsqrt.f32 %v2833_v26  ;;  %v3991_v3 = vpack.c.bf16 %v3087_v58, %v3086_v57 }
0x127e   : > { %v5255_v11 = vadd.f32 %v4273_v10, %v2783_v59 }
0x127f   : > { %v5252_v61 = vadd.f32 %v4272_v41, %v2778_v60 }
0x1280   : > { %v2801_v13 = vsel %vm795_vm1, %v5255_v11, 0.0 }
0x1281   : > { %v2798_v12 = vsel %vm795_vm1, %v5252_v61, 0.0 }
0x1282   : > { %2799 = vadd.xlane.f32.xlu0 %v2798_v12 }
0x1286   : > { %2802 = vadd.xlane.f32.xlu0 %v2801_v13 }
0x1287   : > { %v4247_v38 = vpop.eup %4246 }
0x1288   : > { %v2841_v62 = vmul.f32 %v4247_v38, %v2809_v30  ;;  %v3084_v30 = vld [vmem:[%s4923_s30 + $0x20] sm:$0xff]  ;;  %s5453_s30 = sld [smem:[#allocation28_spill]] (!%p3588_p5) }
0x1289   : > { %v3987_v24 = vpack.c.bf16 %v3085_v0, %v3084_v30 }
0x128a   : > { %2817 = vadd.xlane.f32.xlu0 %v2816_v15  ;;  %v2851_v40 = vmul.f32 %v3576_v27, %v2841_v62 }
0x128b   : > { %3988 = vmatprep.subr.bf16.mxu0 %v3987_v24 }
0x128c   : > { %v2861_v47 = vadd.f32 %v3577_v44, %v2851_v40  ;;  %3990 = vmatpush3.bf16.msra.mxu0 %v3987_v24 }
0x128d   : > { %3992 = vmatprep.subr.bf16.mxu0 %v3991_v3 }
0x1290   : > { %3994 = vmatpush3.bf16.msra.mxu0 %v3991_v3 }
0x130f   : > { %v2800_v23 = vpop.xlane.xlu0 %2799 }
0x1310   : > { %v2806_v7 = vmul.f32 0.03125, %v2800_v23 }
0x1312   : > { %v2810_v25 = vsub.f32 %v5252_v61, %v2806_v7 }
0x1313   : > { %v2803_v29 = vpop.xlane.xlu0 %2802 }
0x1314   : > { %v2807_v31 = vmul.f32 0.03125, %v2803_v29  ;;  %v2814_v9 = vmul.f32 %v2810_v25, %v2810_v25 }
0x1316   : > { %v2811_v63 = vsub.f32 %v5255_v11, %v2807_v31  ;;  %v2822_v35 = vsel %vm795_vm1, %v2814_v9, 0.0 }
0x1317   : > { %2823 = vadd.xlane.f32.xlu0 %v2822_v35  ;;  %v2818_v33 = vpop.xlane.xlu0 %2817 }
0x1318   : > { %v2828_v36 = vmul.f32 0.03125, %v2818_v33  ;;  %v2815_v32 = vmul.f32 %v2811_v63, %v2811_v63 }
0x131a   : > { %v2832_v6 = vadd.f32 1e-05, %v2828_v36  ;;  %v2825_v37 = vsel %vm795_vm1, %v2815_v32, 0.0 }
0x131b   : > { %2826 = vadd.xlane.f32.xlu1 %v2825_v37 }
0x131c   : > { %4248 = vrsqrt.f32 %v2832_v6 }
0x1326   : > { %v4249_v4 = vpop.eup %4248 }
0x1327   : > { %v2840_v28 = vmul.f32 %v4249_v4, %v2808_v5 }
0x1329   : > { %v2850_v45 = vmul.f32 %v3576_v27, %v2840_v28 }
0x132b   : > { %v2860_v46 = vadd.f32 %v3577_v44, %v2850_v45 }
0x132d   : > { %3847 = vmatprep.mubr.msk.f32.mxu1 %vm795_vm1, %v2860_v46 }
0x132e   : > { %3848 = vmatmul.mubr.msk.f32.vlgmr.msra.gmra.mrb[22].mxu1 %vm795_vm1, %v2861_v47 }
0x13a4   : > { %v2824_v48 = vpop.xlane.xlu0 %2823 }
0x13a5   : > { %v2830_v51 = vmul.f32 0.03125, %v2824_v48 }
0x13a7   : > { %v2834_v53 = vadd.f32 1e-05, %v2830_v51 }
0x13a8   : > { %v2827_v54 = vpop.xlane.xlu1 %2826 }
0x13a9   : > { %4250 = vrsqrt.f32 %v2834_v53  ;;  %v2831_v34 = vmul.f32 0.03125, %v2827_v54 }
0x13ab   : > { %v2835_v56 = vadd.f32 1e-05, %v2831_v34 }
0x13ad   : > { %4252 = vrsqrt.f32 %v2835_v56 }
0x13b3   : > { %v4251_v2 = vpop.eup %4250 }
0x13b4   : > { %v2842_v59 = vmul.f32 %v4251_v2, %v2810_v25 }
0x13b6   : > { %v2852_v60 = vmul.f32 %v3576_v27, %v2842_v59 }
0x13b7   : > { %v4253_v41 = vpop.eup %4252 }
0x13b8   : > { %v2862_v5 = vadd.f32 %v3577_v44, %v2852_v60  ;;  %v2843_v10 = vmul.f32 %v4253_v41, %v2811_v63 }
0x13ba   : > { %3850 = vmatprep.mubr.msk.f32.mxu1 %vm795_vm1, %v2862_v5  ;;  %v2853_v12 = vmul.f32 %v3576_v27, %v2843_v10 }
0x13bc   : > { %v2863_v13 = vadd.f32 %v3577_v44, %v2853_v12 }
0x13be   : > { %3851 = vmatmul.mubr.msk.f32.gmra.mrb[24].mxu1 %vm795_vm1, %v2863_v13 }
0x1401   : > { %v3849_v15 = vpop.f32.mrb[22].mxu1 }
0x1402   : > { %v2959_v17 = vadd.f32 %v3849_v15, %v5291_v14  ;;  %v2953_v1 = vpop.f32.mrb[23].mxu1 }
0x1403   : > { %v2954_v18 = vadd.f32 %v5291_v14, %v2953_v1 }
0x1404   : > { %v2977_v19 = vmul.f32 0.70710677, %v2959_v17  ;;  %v2973_v2 = vmul.f32 0.5, %v2959_v17 }
0x1405   : > { %v2976_v20 = vmul.f32 0.70710677, %v2954_v18  ;;  %v2972_v58 = vmul.f32 0.5, %v2954_v18 }
0x1406   : > { %v2981_v21 = vand.u32 2147483647, %v2977_v19  ;;  %vm3061_vm6 = vcmp.ge.f32.partialorder %v2977_v19, 0.0 }
0x1407   : > { %v2980_v22 = vand.u32 2147483647, %v2976_v20  ;;  %vm3060_vm7 = vcmp.ge.f32.partialorder %v2976_v20, 0.0 }
0x1408   : > { %v2985_v42 = vmul.f32 0.3275911, %v2981_v21  ;;  %v3037_v26 = vsub.f32 0.0, %v2981_v21 }
0x1409   : > { %v2984_v23 = vmul.f32 0.3275911, %v2980_v22  ;;  %v3036_v29 = vsub.f32 0.0, %v2980_v22 }
0x140a   : > { %v2989_v7 = vadd.f32 1.0, %v2985_v42  ;;  %v3041_v9 = vmul.f32 %v3037_v26, %v2981_v21 }
0x140b   : > { %v2988_v25 = vadd.f32 1.0, %v2984_v23  ;;  %v3040_v33 = vmul.f32 %v3036_v29, %v2980_v22 }
0x140c   : > { %4254 = vrcp.f32 %v2989_v7  ;;  %v3046_v6 = vmul.f32 1.442695, %v3041_v9 }
0x140d   : > { %4256 = vrcp.f32 %v2988_v25  ;;  %v3044_v62 = vmul.f32 1.442695, %v3040_v33 }
0x140e   : > { %4258 = vpow2.f32 %v3046_v6 }
0x140f   : > { %4260 = vpow2.f32 %v3044_v62 }
0x1416   : > { %v4255_v31 = vpop.eup %4254 }
0x1417   : > { %v4257_v63 = vpop.eup %4256  ;;  %v3001_v35 = vmul.f32 1.0614054, %v4255_v31 }
0x1418   : > { %v3000_v36 = vmul.f32 1.0614054, %v4257_v63  ;;  %v4259_v52 = vpop.eup %4258 }
0x1419   : > { %v3005_v32 = vadd.f32 -1.4531521, %v3001_v35  ;;  %v4261_v54 = vpop.eup %4260 }
0x141a   : > { %v3004_v37 = vadd.f32 -1.4531521, %v3000_v36 }
0x141b   : > { %v3009_v38 = vmul.f32 %v4255_v31, %v3005_v32 }
0x141c   : > { %v3008_v27 = vmul.f32 %v4257_v63, %v3004_v37 }
0x141d   : > { %v3013_v4 = vadd.f32 1.4214138, %v3009_v38 }
0x141e   : > { %v3012_v28 = vadd.f32 1.4214138, %v3008_v27 }
0x141f   : > { %v3017_v40 = vmul.f32 %v4255_v31, %v3013_v4 }
0x1420   : > { %v3016_v44 = vmul.f32 %v4257_v63, %v3012_v28 }
0x1421   : > { %v3021_v45 = vadd.f32 -0.28449672, %v3017_v40 }
0x1422   : > { %v3020_v46 = vadd.f32 -0.28449672, %v3016_v44 }
0x1423   : > { %v3025_v47 = vmul.f32 %v4255_v31, %v3021_v45 }
0x1424   : > { %v3024_v48 = vmul.f32 %v4257_v63, %v3020_v46 }
0x1425   : > { %v3029_v49 = vadd.f32 0.2548296, %v3025_v47 }
0x1426   : > { %v3028_v50 = vadd.f32 0.2548296, %v3024_v48 }
0x1427   : > { %v3033_v51 = vmul.f32 %v4255_v31, %v3029_v49 }
0x1428   : > { %v3032_v53 = vmul.f32 %v4257_v63, %v3028_v50 }
0x1429   : > { %v3053_v55 = vmul.f32 %v4259_v52, %v3033_v51 }
0x142a   : > { %v3052_v16 = vmul.f32 %v4261_v54, %v3032_v53 }
0x142b   : > { %v3057_v34 = vsub.f32 1.0, %v3053_v55 }
0x142c   : > { %v3056_v8 = vsub.f32 1.0, %v3052_v16 }
0x142d   : > { %v3065_v56 = vsub.f32 0.0, %v3057_v34 }
0x142e   : > { %v3064_v30 = vsub.f32 0.0, %v3056_v8 }
0x142f   : > { %v3069_v0 = vsel %vm3061_vm6, %v3057_v34, %v3065_v56 }
0x1430   : > { %v3073_v24 = vadd.f32 1.0, %v3069_v0  ;;  %v3068_v57 = vsel %vm3060_vm7, %v3056_v8, %v3064_v30 }
0x1431   : > { %v3072_v3 = vadd.f32 1.0, %v3068_v57  ;;  %v3583_v57 = vld [vmem:[%s775_s19] ss:$0 sm:$0xff] }
0x1432   : > { %v3077_v60 = vmul.f32 %v3073_v24, %v2973_v2 }
0x1433   : > { %v3076_v59 = vmul.f32 %v3072_v3, %v2972_v58 }
0x1435   : > { %3869 = vmatprep.mubr.msk.f32.mxu0 %vm3095_vm8, %v3076_v59 }
0x1436   : > { %3870 = vmatmul.mubr.msk.f32.vlgmr.msra.gmra.mrb[18].mxu0 %vm3095_vm8, %v3077_v60 }
0x1491   : > { %v3852_v41 = vpop.f32.mrb[24].mxu1 }
0x1492   : > { %v2969_v5 = vadd.f32 %v3852_v41, %v5291_v14  ;;  %v2963_v10 = vpop.f32.mrb[25].mxu1 }
0x1493   : > { %v2964_v12 = vadd.f32 %v5291_v14, %v2963_v10 }
0x1494   : > { %v2979_v13 = vmul.f32 0.70710677, %v2969_v5  ;;  %v2975_v30 = vmul.f32 0.5, %v2969_v5 }
0x1495   : > { %v2978_v15 = vmul.f32 0.70710677, %v2964_v12  ;;  %v2974_v8 = vmul.f32 0.5, %v2964_v12 }
0x1496   : > { %v2983_v1 = vand.u32 2147483647, %v2979_v13  ;;  %vm3063_vm9 = vcmp.ge.f32.partialorder %v2979_v13, 0.0 }
0x1497   : > { %v2982_v19 = vand.u32 2147483647, %v2978_v15  ;;  %vm3062_vm10 = vcmp.ge.f32.partialorder %v2978_v15, 0.0 }
0x1498   : > { %v2987_v18 = vmul.f32 0.3275911, %v2983_v1  ;;  %v3039_v22 = vsub.f32 0.0, %v2983_v1 }
0x1499   : > { %v2986_v20 = vmul.f32 0.3275911, %v2982_v19  ;;  %v3038_v42 = vsub.f32 0.0, %v2982_v19 }
0x149a   : > { %v2991_v17 = vadd.f32 1.0, %v2987_v18  ;;  %v3043_v7 = vmul.f32 %v3039_v22, %v2983_v1 }
0x149b   : > { %v2990_v21 = vadd.f32 1.0, %v2986_v20  ;;  %v3042_v29 = vmul.f32 %v3038_v42, %v2982_v19 }
0x149c   : > { %4262 = vrcp.f32 %v2991_v17  ;;  %v3050_v14 = vmul.f32 1.442695, %v3043_v7 }
0x149d   : > { %4264 = vrcp.f32 %v2990_v21  ;;  %v3048_v33 = vmul.f32 1.442695, %v3042_v29 }
0x149e   : > { %4266 = vpow2.f32 %v3050_v14 }
0x149f   : > { %4268 = vpow2.f32 %v3048_v33 }
0x14a6   : > { %v4263_v23 = vpop.eup %4262 }
0x14a7   : > { %v4265_v25 = vpop.eup %4264  ;;  %v3003_v26 = vmul.f32 1.0614054, %v4263_v23 }
0x14a8   : > { %v3002_v31 = vmul.f32 1.0614054, %v4265_v25  ;;  %v4267_v46 = vpop.eup %4266 }
0x14a9   : > { %v3007_v9 = vadd.f32 -1.4531521, %v3003_v26  ;;  %v4269_v48 = vpop.eup %4268 }
0x14aa   : > { %v3006_v63 = vadd.f32 -1.4531521, %v3002_v31 }
0x14ab   : > { %v3011_v35 = vmul.f32 %v4263_v23, %v3007_v9 }
0x14ac   : > { %v3010_v36 = vmul.f32 %v4265_v25, %v3006_v63 }
0x14ad   : > { %v3015_v32 = vadd.f32 1.4214138, %v3011_v35 }
0x14ae   : > { %v3014_v6 = vadd.f32 1.4214138, %v3010_v36 }
0x14af   : > { %v3019_v37 = vmul.f32 %v4263_v23, %v3015_v32 }
0x14b0   : > { %v3018_v38 = vmul.f32 %v4265_v25, %v3014_v6 }
0x14b1   : > { %v3023_v62 = vadd.f32 -0.28449672, %v3019_v37 }
0x14b2   : > { %v3022_v27 = vadd.f32 -0.28449672, %v3018_v38 }
0x14b3   : > { %v3027_v4 = vmul.f32 %v4263_v23, %v3023_v62 }
0x14b4   : > { %v3026_v28 = vmul.f32 %v4265_v25, %v3022_v27 }
0x14b5   : > { %v3031_v40 = vadd.f32 0.2548296, %v3027_v4 }
0x14b6   : > { %v3030_v44 = vadd.f32 0.2548296, %v3026_v28 }
0x14b7   : > { %v3035_v45 = vmul.f32 %v4263_v23, %v3031_v40 }
0x14b8   : > { %v3034_v47 = vmul.f32 %v4265_v25, %v3030_v44 }
0x14b9   : > { %v3055_v49 = vmul.f32 %v4267_v46, %v3035_v45 }
0x14ba   : > { %v3054_v50 = vmul.f32 %v4269_v48, %v3034_v47 }
0x14bb   : > { %v3059_v51 = vsub.f32 1.0, %v3055_v49  ;;  %v3589_v49 = vld [vmem:[%s5453_s30] ss:$0 sm:$0xff] (!%p3588_p5) }
0x14bc   : > { %v3058_v52 = vsub.f32 1.0, %v3054_v50 }
0x14bd   : > { %v3067_v53 = vsub.f32 0.0, %v3059_v51 }
0x14be   : > { %v3066_v54 = vsub.f32 0.0, %v3058_v52 }
0x14bf   : > { %v3071_v55 = vsel %vm3063_vm9, %v3059_v51, %v3067_v53  ;;  %v3590_v51 = vld [vmem:[%s5454_s21] ss:$0 sm:$0xff] (!%p3588_p5) }
0x14c0   : > { %v3075_v16 = vadd.f32 1.0, %v3071_v55  ;;  %v3070_v34 = vsel %vm3062_vm10, %v3058_v52, %v3066_v54 }
0x14c1   : > { %v3074_v56 = vadd.f32 1.0, %v3070_v34 }
0x14c2   : > { %v3079_v24 = vmul.f32 %v3075_v16, %v2975_v30 }
0x14c3   : > { %v3078_v0 = vmul.f32 %v3074_v56, %v2974_v8 }
0x14c5   : > { %3872 = vmatprep.mubr.msk.f32.mxu0 %vm3095_vm8, %v3078_v0 }
0x14c6   : > { %3873 = vmatmul.mubr.msk.f32.gmra.mrb[20].mxu0 %vm3095_vm8, %v3079_v24 }
0x1509   : > { %v3871_v58 = vpop.f32.mrb[18].mxu0 }
0x150a   : > { %v3180_v3 = vadd.f32 %v3871_v58, %v3583_v57  ;;  %v3174_v2 = vpop.f32.mrb[19].mxu0 }
0x150b   : > { %v3175_v59 = vadd.f32 %v3583_v57, %v3174_v2 }
0x150c   : > { %v3194_v60 = vadd.f32 %v3180_v3, %v5234_v43 }
0x150d   : > { %v3193_v41 = vadd.f32 %v3175_v59, %v5232_v39 }
0x150e   : > { %3198 = vst.msk [vmem:[#allocation11 + $0x8] sm:$0xff] %vm795_vm1, %v3194_v60  ;;  %v3210_v19 = vsel (!%p3588_p5), %vm795_vm1, %v3194_v60, 0.0 }
0x150f   : > { %3197 = vst.msk [vmem:[#allocation11] sm:$0xff] %vm795_vm1, %v3193_v41  ;;  %v3207_v39 = vsel (!%p3588_p5), %vm795_vm1, %v3193_v41, 0.0 }
0x1510   : > { %3208 = vadd.xlane.f32.xlu0 (!%p3588_p5), %v3207_v39 }
0x1514   : > { %3211 = vadd.xlane.f32.xlu0 (!%p3588_p5), %v3210_v19 }
0x1599   : > { %v3874_v5 = vpop.f32.mrb[20].mxu0  ;;  %3204 = sbr.rel (%p3588_p5) target bundleno = 5853 (0x16dd), region = 116 }
0x159a   : > { %v3190_v10 = vadd.f32 %v3874_v5, %v3583_v57  ;;  %v3184_v12 = vpop.f32.mrb[21].mxu0 }
0x159b   : > { %v3185_v13 = vadd.f32 %v3583_v57, %v3184_v12 }
0x159c   : > { %v3196_v15 = vadd.f32 %v3190_v10, %v5255_v11 }
0x159d   : > { %v3195_v1 = vadd.f32 %v3185_v13, %v5252_v61  ;;  %v3209_v61 = vpop.xlane.xlu0 (!%p3588_p5), %3208 }
0x159e   : > { %3200 = vst.msk [vmem:[#allocation11 + $0x18] sm:$0xff] %vm795_vm1, %v3196_v15  ;;  %v3216_v18 = vsel (!%p3588_p5), %vm795_vm1, %v3196_v15, 0.0  ;;  %v3219_v20 = vmul.f32 (!%p3588_p5), 0.03125, %v3209_v61 }
0x159f   : > { %3199 = vst.msk [vmem:[#allocation11 + $0x10] sm:$0xff] %vm795_vm1, %v3195_v1  ;;  %v3213_v43 = vsel (!%p3588_p5), %vm795_vm1, %v3195_v1, 0.0 }
0x15a0   : > { %3214 = vadd.xlane.f32.xlu1 %v3213_v43  ;;  %v3223_v21 = vsub.f32 %v3193_v41, %v3219_v20 }
0x15a1   : > { %v3212_v42 = vpop.xlane.xlu0 %3211 }
0x15a2   : > { %v3220_v7 = vmul.f32 0.03125, %v3212_v42  ;;  %v3227_v26 = vmul.f32 %v3223_v21, %v3223_v21 }
0x15a4   : > { %3217 = vadd.xlane.f32.xlu1 %v3216_v18  ;;  %v3224_v31 = vsub.f32 %v3194_v60, %v3220_v7  ;;  %v3231_v14 = vsel %vm795_vm1, %v3227_v26, 0.0 }
0x15a5   : > { %3232 = vadd.xlane.f32.xlu0 %v3231_v14 }
0x15a6   : > { %v3228_v35 = vmul.f32 %v3224_v31, %v3224_v31 }
0x15a8   : > { %v3234_v36 = vsel %vm795_vm1, %v3228_v35, 0.0 }
0x15a9   : > { %3235 = vadd.xlane.f32.xlu1 %v3234_v36 }
0x162d   : > { %v3215_v11 = vpop.xlane.xlu1 %3214 }
0x162e   : > { %v3221_v17 = vmul.f32 0.03125, %v3215_v11 }
0x1630   : > { %v3225_v22 = vsub.f32 %v3195_v1, %v3221_v17 }
0x1631   : > { %v3218_v23 = vpop.xlane.xlu1 %3217 }
0x1632   : > { %v3222_v25 = vmul.f32 0.03125, %v3218_v23  ;;  %v3229_v29 = vmul.f32 %v3225_v22, %v3225_v22  ;;  %v3233_v6 = vpop.xlane.xlu0 %3232 }
0x1633   : > { %v3243_v37 = vmul.f32 0.03125, %v3233_v6 }
0x1634   : > { %v3226_v9 = vsub.f32 %v3196_v15, %v3222_v25  ;;  %v3237_v63 = vsel %vm795_vm1, %v3229_v29, 0.0 }
0x1635   : > { %3238 = vadd.xlane.f32.xlu0 %v3237_v63  ;;  %v3247_v38 = vadd.f32 1e-05, %v3243_v37 }
0x1636   : > { %v3230_v33 = vmul.f32 %v3226_v9, %v3226_v9  ;;  %v3236_v62 = vpop.xlane.xlu1 %3235 }
0x1637   : > { %4274 = vrsqrt.f32 %v3247_v38  ;;  %v3244_v4 = vmul.f32 0.03125, %v3236_v62 }
0x1638   : > { %v3240_v32 = vsel %vm795_vm1, %v3230_v33, 0.0 }
0x1639   : > { %3241 = vadd.xlane.f32.xlu1 %v3240_v32  ;;  %v3248_v40 = vadd.f32 1e-05, %v3244_v4 }
0x163b   : > { %4276 = vrsqrt.f32 %v3248_v40 }
0x1641   : > { %v4275_v48 = vpop.eup %4274 }
0x1642   : > { %v3255_v50 = vmul.f32 %v4275_v48, %v3223_v21 }
0x1644   : > { %v3265_v52 = vmul.f32 %v3589_v49, %v3255_v50 }
0x1645   : > { %v4277_v53 = vpop.eup %4276 }
0x1646   : > { %v3275_v55 = vadd.f32 %v3590_v51, %v3265_v52  ;;  %v3256_v16 = vmul.f32 %v4277_v53, %v3224_v31 }
0x1648   : > { %3279 = vst.msk [vmem:[#allocation11] sm:$0xff] %vm795_vm1, %v3275_v55  ;;  %v3266_v8 = vmul.f32 %v3589_v49, %v3256_v16 }
0x164a   : > { %v3276_v0 = vadd.f32 %v3590_v51, %v3266_v8 }
0x164c   : > { %3280 = vst.msk [vmem:[#allocation11 + $0x8] sm:$0xff] %vm795_vm1, %v3276_v0 }
0x16c2   : > { %v3239_v27 = vpop.xlane.xlu0 %3238 }
0x16c3   : > { %v3245_v28 = vmul.f32 0.03125, %v3239_v27 }
0x16c5   : > { %v3249_v44 = vadd.f32 1e-05, %v3245_v28 }
0x16c6   : > { %v3242_v45 = vpop.xlane.xlu1 %3241 }
0x16c7   : > { %v3246_v46 = vmul.f32 0.03125, %v3242_v45  ;;  %4278 = vrsqrt.f32 %v3249_v44 }
0x16c9   : > { %v3250_v47 = vadd.f32 1e-05, %v3246_v46 }
0x16cb   : > { %4280 = vrsqrt.f32 %v3250_v47 }
0x16d1   : > { %v4279_v54 = vpop.eup %4278 }
0x16d2   : > { %v3257_v34 = vmul.f32 %v4279_v54, %v3225_v22 }
0x16d4   : > { %v3267_v30 = vmul.f32 %v3589_v49, %v3257_v34 }
0x16d5   : > { %v4281_v56 = vpop.eup %4280 }
0x16d6   : > { %v3258_v24 = vmul.f32 %v4281_v56, %v3226_v9  ;;  %v3277_v57 = vadd.f32 %v3590_v51, %v3267_v30 }
0x16d8   : > { %v3268_v58 = vmul.f32 %v3589_v49, %v3258_v24  ;;  %3281 = vst.msk [vmem:[#allocation11 + $0x10] sm:$0xff] %vm795_vm1, %v3277_v57 }
0x16da   : > { %v3278_v3 = vadd.f32 %v3590_v51, %v3268_v58 }
0x16dc   : > { %3282 = vst.msk [vmem:[#allocation11 + $0x18] sm:$0xff] %vm795_vm1, %v3278_v3 }
0x16dd PF: > { %p4040_p10 = scmp.eq.s32.totalorder %s4660_s25, 9  ;;  %s4554_s27 = smov [#allocation11]  }
0x16de   : > { %s3289_s2 = sshll.u32 %s4554_s27, 4  ;;  %s3290_s2 = int_to_ptr.vmem [resolvable:$true] %s3289_s2 }
0x16df   : > { %s4458_s29 = scalar_lea.vmem %s3290_s2, 512  ;;  %p4465_p7 = scmp.lt.s32.totalorder %s3290_s2, %s3290_s2 }
0x16e0   : > { %p4459_p12 = scmp.ne.s32.totalorder %s3290_s2, %s4458_s29  ;;  %p4466_p0 = scmp.lt.s32.totalorder %s4458_s29, %s4458_s29 }
0x16e2   : > { %p4460_p13 = pnand %p4459_p12, %p4040_p10  ;;  %p4467_p6 = por %p4466_p0, %p4465_p7 }
0x16e4   : > { %p4461_p3 = pneg %p4460_p13 }
0x16e6   : > { %p4468_p2 = pnand %p4467_p6, %p4461_p3 }
0x16e8   : > { %4471 = shalt.err (!%p4468_p2)
}
0x16e9   : > { %s5455_s24 = sld [smem:[#allocation30_spill]] }
0x16ef   : > { %s5456_s20 = smov %s5455_s24  ;;  %s4472_s4 = scalar_lea.hbm %s5455_s24, 512 }
0x16f0   : > { %p4473_p9 = scmp.ne.s32.totalorder %s5456_s20, %s4472_s4  ;;  %p4478_p11 = scmp.lt.u32.totalorder %s4472_s4, %s5456_s20 }
0x16f2   : > { %p4474_p4 = pnand %p4473_p9, %p4040_p10 }
0x16f4   : > { %p4475_p1 = pneg %p4474_p4 }
0x16f6   : > { %p4480_p8 = pnand %p4478_p11, %p4475_p1 }
0x16f8   : > { %4483 = shalt.err (!%p4480_p8)
}
0x16f9   : > { %s4555_s10 = smov 128  }
0x16fa   : > { %4012 = dma.vmem_to_hbm [thread:$0]  (%p4040_p10), %s3290_s2, 512, %s5456_s20, [#allocation4], %s4555_s10, %s4555_s10, %s4551_s1  }
0x16fb   : > { %4513 = dma.done.wait (%p4040_p10), [#allocation4], 512  }
0x16fc   : > { %4515 = vsyncadd (%p4040_p10), [#allocation4], 4294966784 }
0x16fd PF: > { %s5457_s24 = sld [smem:[#allocation17_spill]]  ;;  %s5458_s28 = sld [smem:[#allocation16_spill]] }
0x16fe   : > { %s5459_s23 = sld [smem:[#allocation18_spill]]  ;;  %s5460_s21 = smov %s4522_s22 }
0x1703   : > { %p26_p5 = scmp.ge.s32.totalorder %s5457_s24, 12   ;;  %s5461_s22 = smov %s5458_s28 }
0x1705   :  { %28 = sbr.rel (!%p26_p5) target bundleno = 17 (0x11), region = 193 }
0x170c   :  { %3305 = vsyncpa [#allocation3], 1 }
0x170d   :  { %3307 = vsyncpa [#allocation3 + $0x1], 1 }
0x170e   :  { %3308 = vsyncpa [#allocation6], 1 }
0x170f   :  { %3309 = vsyncpa [#allocation4], 1 }
0x1710   :  { %3311 = vsyncpa [#allocation4 + $0x1], 1 }

</bundles_post_ra>
